<compile_context>
chip_gen: v5e
topology: v5e:2x2
jax: 0.10.0
libtpu: 0.0.40
codegen_flags: <defaults>
</compile_context>

<pallas_src>
import jax
import jax.numpy as jnp
from jax.experimental import pallas as pl
from jax.experimental.pallas import tpu as pltpu

BN_EPS = 1e-5


# ---------------------------------------------------------------------------
# Tiling helpers
# ---------------------------------------------------------------------------
def _pick_row_tile(H2, W2, max_lanes=4096):
    """Largest even divisor TR of H2 with TR*W2 % 128 == 0 and TR*W2 <= cap."""
    best = None
    for tr in range(2, H2 + 1, 2):
        if H2 % tr:
            continue
        n = tr * W2
        if n % 128:
            continue
        if n <= max_lanes:
            best = tr
    if best is None:  # fall back: smallest valid tile even if above the cap
        for tr in range(2, H2 + 1, 2):
            if H2 % tr == 0 and (tr * W2) % 128 == 0:
                best = tr
                break
    if best is None:
        raise ValueError(f"no valid row tile for H2={H2}, W2={W2}")
    return best


def _halo_width(W2):
    """Width of the aligned halo blocks (>= one image row, multiple of 128)."""
    if W2 % 128 == 0:
        return W2
    if W2 > 128:
        raise ValueError("W2 must be <= 128 or a multiple of 128")
    return 128


def _wrap_masks(N, W2):
    """(2, N) 0/1 masks killing the column positions that wrap across rows."""
    pos = jnp.arange(N)
    return jnp.stack([(pos % W2 != 0).astype(jnp.float32),        # kw == 0
                      (pos % W2 != W2 - 1).astype(jnp.float32)],  # kw == 2
                     axis=0)


def _parity_masks(L, W2):
    """(4, L) 0/1 masks selecting the (row%2, col%2) phase of each fine pixel.

    Tile-local row 0 is absolute fine row i*TR - 1; TR is even, so absolute
    row parity == (local_row + 1) % 2 independently of the grid index.
    """
    pos = jnp.arange(L)
    rpar = ((pos // W2) + 1) % 2
    cpar = pos % 2  # W2 is even, so flat parity == column parity
    return jnp.stack([((rpar == pr) & (cpar == pc)).astype(jnp.float32)
                      for pr in range(2) for pc in range(2)], axis=0)


# ---------------------------------------------------------------------------
# Pass 1: fused ConvTranspose2d(2,2) + concat + Conv2d(2C->C, 3x3) + BN1 sums
# ---------------------------------------------------------------------------
def _conv1_pass(x2f, x1f, w1k, wdec, bdec, *, C, H2, W2, TR):
    B = x2f.shape[0]
    P = H2 * W2
    N = TR * W2
    nblk = P // N
    HW = _halo_width(W2)
    npb = N // HW
    totb = P // HW
    Cout = w1k.shape[0]
    L = (TR + 2) * W2

    mpar = _parity_masks(L, W2)   # (4, L)
    mwrap = _wrap_masks(N, W2)    # (2, N)

    def kernel(x2t, x2m, x2b, x1t, x1m, x1b,
               w_ref, wd_ref, bd_ref, mp_ref, mw_ref, y_ref, st_ref):
        i = pl.program_id(1)
        nprog = pl.num_programs(1)
        top_keep = jnp.where(i > 0, 1.0, 0.0)
        bot_keep = jnp.where(i < nprog - 1, 1.0, 0.0)

        lane_l = jax.lax.broadcasted_iota(jnp.int32, (1, L), 1)
        rowkeep = (jnp.where(lane_l < W2, top_keep, 1.0) *
                   jnp.where(lane_l >= (TR + 1) * W2, bot_keep, 1.0))  # (1, L)

        def tilecat(t_ref, m_ref, b_ref):
            # tile covering fine rows [i*TR - 1, i*TR + TR] as one flat slab
            return jnp.concatenate(
                [t_ref[0, :, HW - W2:], m_ref[0], b_ref[0, :, :W2]], axis=-1)

        # ---- skip connection tile (C, L); out-of-image rows zeroed ---------
        a = tilecat(x2t, x2m, x2b).astype(jnp.float32) * rowkeep

        # ---- fused ConvTranspose2d: parity-masked 1x1 matmul on x1rep ------
        xr = tilecat(x1t, x1m, x1b)                                   # bf16
        R = jax.lax.dot_general(wd_ref[...], xr, (((1,), (0,)), ((), ())),
                                preferred_element_type=jnp.float32)   # (4C, L)
        mp = mp_ref[...]
        up = jnp.zeros((C, L), jnp.float32)
        for q in range(4):                                  # (row%2, col%2)
            up = up + mp[q:q + 1, :] * R[q * C:(q + 1) * C, :]
        up = (up + bd_ref[...]) * rowkeep                   # bias, then zero pad rows

        # ---- block im2col: 9 statically shifted slabs -> one matmul --------
        zpad = jnp.zeros((2 * C, 1), jnp.float32)
        xcat = jnp.concatenate(
            [zpad, jnp.concatenate([a, up], axis=0), zpad], axis=-1)  # (2C, L+2)

        mw = mw_ref[...]
        m_left, m_right = mw[0:1, :], mw[1:2, :]
        slabs = []
        for kh in range(3):
            for kw in range(3):
                s = kh * W2 + kw
                slab = xcat[:, s:s + N]
                if kw == 0:
                    slab = slab * m_left
                elif kw == 2:
                    slab = slab * m_right
                slabs.append(slab)
        patch = jnp.concatenate(slabs, axis=0).astype(jnp.bfloat16)   # (9*2C, N)

        y = jax.lax.dot_general(w_ref[...], patch, (((1,), (0,)), ((), ())),
                                preferred_element_type=jnp.float32)   # (Cout, N)
        y_ref[0] = y.astype(y_ref.dtype)
        st_ref[0, 0] = jnp.concatenate(
            [jnp.sum(y, axis=1, keepdims=True),
             jnp.sum(y * y, axis=1, keepdims=True)], axis=1)          # (Cout, 2)

    def mid_map(b, i):
        return (b, 0, i)

    def top_map(b, i):
        return (b, 0, jnp.maximum(i * npb - 1, 0))

    def bot_map(b, i):
        return (b, 0, jnp.minimum((i + 1) * npb, totb - 1))

    def cmap(b, i):
        return (0, 0)

    def src_specs():
        return [pl.BlockSpec((1, C, HW), top_map),
                pl.BlockSpec((1, C, N), mid_map),
                pl.BlockSpec((1, C, HW), bot_map)]

    return pl.pallas_call(
        kernel,
        grid=(B, nblk),
        in_specs=(src_specs() + src_specs()
                  + [pl.BlockSpec(w1k.shape, cmap),
                     pl.BlockSpec(wdec.shape, cmap),
                     pl.BlockSpec(bdec.shape, cmap),
                     pl.BlockSpec(mpar.shape, cmap),
                     pl.BlockSpec(mwrap.shape, cmap)]),
        out_specs=[pl.BlockSpec((1, Cout, N), mid_map),
                   pl.BlockSpec((1, 1, Cout, 2), lambda b, i: (b, i, 0, 0))],
        out_shape=[jax.ShapeDtypeStruct((B, Cout, P), jnp.bfloat16),
                   jax.ShapeDtypeStruct((B, nblk, Cout, 2), jnp.float32)],
        compiler_params=pltpu.CompilerParams(
            dimension_semantics=("parallel", "parallel")),
    )(x2f, x2f, x2f, x1f, x1f, x1f, w1k, wdec, bdec, mpar, mwrap)


# ---------------------------------------------------------------------------
# Pass 2: BN1-normalize + ReLU prologue fused with Conv2d(C->C/2) + BN2 sums
# ---------------------------------------------------------------------------
def _conv2_pass(y1, w2k, scale1, shift1, *, C, H2, W2, TR):
    B = y1.shape[0]
    P = H2 * W2
    N = TR * W2
    nblk = P // N
    HW = _halo_width(W2)
    npb = N // HW
    totb = P // HW
    Cout = w2k.shape[0]
    L = (TR + 2) * W2

    mwrap = _wrap_masks(N, W2)

    def kernel(yt, ym, yb, w_ref, sc_ref, sh_ref, mw_ref, y_ref, st_ref):
        i = pl.program_id(1)
        nprog = pl.num_programs(1)
        top_keep = jnp.where(i > 0, 1.0, 0.0)
        bot_keep = jnp.where(i < nprog - 1, 1.0, 0.0)

        lane_l = jax.lax.broadcasted_iota(jnp.int32, (1, L), 1)
        rowkeep = (jnp.where(lane_l < W2, top_keep, 1.0) *
                   jnp.where(lane_l >= (TR + 1) * W2, bot_keep, 1.0))

        t = jnp.concatenate(
            [yt[0, :, HW - W2:], ym[0], yb[0, :, :W2]], axis=-1).astype(jnp.float32)
        # activation FIRST, then zero-mask halo rows (conv pads the activated map)
        t = jnp.maximum(t * sc_ref[...] + sh_ref[...], 0.0) * rowkeep

        zpad = jnp.zeros((C, 1), jnp.float32)
        xcat = jnp.concatenate([zpad, t, zpad], axis=-1)              # (C, L+2)

        mw = mw_ref[...]
        m_left, m_right = mw[0:1, :], mw[1:2, :]
        slabs = []
        for kh in range(3):
            for kw in range(3):
                s = kh * W2 + kw
                slab = xcat[:, s:s + N]
                if kw == 0:
                    slab = slab * m_left
                elif kw == 2:
                    slab = slab * m_right
                slabs.append(slab)
        patch = jnp.concatenate(slabs, axis=0).astype(jnp.bfloat16)   # (9C, N)

        y = jax.lax.dot_general(w_ref[...], patch, (((1,), (0,)), ((), ())),
                                preferred_element_type=jnp.float32)
        y_ref[0] = y.astype(y_ref.dtype)
        st_ref[0, 0] = jnp.concatenate(
            [jnp.sum(y, axis=1, keepdims=True),
             jnp.sum(y * y, axis=1, keepdims=True)], axis=1)

    def mid_map(b, i):
        return (b, 0, i)

    def top_map(b, i):
        return (b, 0, jnp.maximum(i * npb - 1, 0))

    def bot_map(b, i):
        return (b, 0, jnp.minimum((i + 1) * npb, totb - 1))

    def cmap(b, i):
        return (0, 0)

    return pl.pallas_call(
        kernel,
        grid=(B, nblk),
        in_specs=[pl.BlockSpec((1, C, HW), top_map),
                  pl.BlockSpec((1, C, N), mid_map),
                  pl.BlockSpec((1, C, HW), bot_map),
                  pl.BlockSpec(w2k.shape, cmap),
                  pl.BlockSpec(scale1.shape, cmap),
                  pl.BlockSpec(shift1.shape, cmap),
                  pl.BlockSpec(mwrap.shape, cmap)],
        out_specs=[pl.BlockSpec((1, Cout, N), mid_map),
                   pl.BlockSpec((1, 1, Cout, 2), lambda b, i: (b, i, 0, 0))],
        out_shape=[jax.ShapeDtypeStruct((B, Cout, P), jnp.float32),
                   jax.ShapeDtypeStruct((B, nblk, Cout, 2), jnp.float32)],
        compiler_params=pltpu.CompilerParams(
            dimension_semantics=("parallel", "parallel")),
    )(y1, y1, y1, w2k, scale1, shift1, mwrap)


# ---------------------------------------------------------------------------
# Pass 3: final BN2-normalize + ReLU (elementwise, big lane-dense blocks)
# ---------------------------------------------------------------------------
def _bn_relu_pass(y2, scale2, shift2, *, W2, TR):
    B, C2, P = y2.shape
    # whole per-batch slab unless it is very large (stay well inside v7x VMEM)
    NB = P if C2 * P * 4 <= (8 << 20) else TR * W2
    nblk = P // NB

    def kernel(y_ref, sc_ref, sh_ref, o_ref):
        o_ref[0] = jnp.maximum(y_ref[0] * sc_ref[...] + sh_ref[...], 0.0)

    def mid_map(b, j):
        return (b, 0, j)

    def cmap(b, j):
        return (0, 0)

    return pl.pallas_call(
        kernel,
        grid=(B, nblk),
        in_specs=[pl.BlockSpec((1, C2, NB), mid_map),
                  pl.BlockSpec(scale2.shape, cmap),
                  pl.BlockSpec(shift2.shape, cmap)],
        out_specs=pl.BlockSpec((1, C2, NB), mid_map),
        out_shape=jax.ShapeDtypeStruct((B, C2, P), jnp.float32),
        compiler_params=pltpu.CompilerParams(
            dimension_semantics=("parallel", "parallel")),
    )(y2, scale2, shift2)


# ---------------------------------------------------------------------------
# BatchNorm finalize (tiny per-channel op between kernels)
# ---------------------------------------------------------------------------
def _bn_scale_shift(stats, gamma, beta, count):
    # NOTE: E[x^2] - E[x]^2 in f32 over the whole batch; guarded with max(.,0).
    tot = stats.sum(axis=(0, 1))                         # (C, 2)
    mean = tot[:, 0] / count
    var = jnp.maximum(tot[:, 1] / count - mean * mean, 0.0)  # biased, as torch
    inv = jax.lax.rsqrt(var + BN_EPS)
    scale = gamma * inv
    shift = beta - mean * scale
    return (scale[:, None].astype(jnp.float32),
            shift[:, None].astype(jnp.float32))


# ---------------------------------------------------------------------------
# Full `Up.forward`  (NCHW in, NCHW out)
# ---------------------------------------------------------------------------
def up_forward(x1, x2, p):
    B, C, H, W = x1.shape
    H2, W2 = 2 * H, 2 * W
    assert x2.shape == (B, C, H2, W2)
    TR = _pick_row_tile(H2, W2)

    # Nearest-neighbour 2x replication of x1 (one cheap XLA op); the 2x2
    # transposed-conv weights are applied in-kernel as a parity-masked 1x1
    # matmul, so no interleave / scatter matmuls are needed anywhere.
    x1rep = jnp.repeat(jnp.repeat(x1, 2, axis=2), 2, axis=3)
    # Flattened-HW layout (free reshape) + bf16 HBM intermediates.
    x1f = x1rep.reshape(B, C, H2 * W2).astype(jnp.bfloat16)
    x2f = x2.reshape(B, C, H2 * W2).astype(jnp.bfloat16)

    y1, st1 = _conv1_pass(x2f, x1f, p["w1k"], p["wdec"], p["bdec"],
                          C=C, H2=H2, W2=W2, TR=TR)
    sc1, sh1 = _bn_scale_shift(st1, p["g1"], p["b1"], B * H2 * W2)

    y2, st2 = _conv2_pass(y1, p["w2k"], sc1, sh1, C=C, H2=H2, W2=W2, TR=TR)
    sc2, sh2 = _bn_scale_shift(st2, p["g2"], p["b2"], B * H2 * W2)

    out = _bn_relu_pass(y2, sc2, sh2, W2=W2, TR=TR)
    return out.reshape(B, C // 2, H2, W2)


# ---------------------------------------------------------------------------
# Pure-JAX reference (torch-layout weights, f32 HIGHEST precision)
# ---------------------------------------------------------------------------
def ref_forward(x1, x2, tp):
    B, C, H, W = x1.shape
    up = jnp.einsum("bchw,cdkl->bdhkwl", x1, tp["wt"],
                    precision=jax.lax.Precision.HIGHEST)
    up = up.reshape(B, C, 2 * H, 2 * W) + tp["bt"][None, :, None, None]
    x = jnp.concatenate([x2, up], axis=1)

    def conv_bn_relu(x, w, g, b):
        y = jax.lax.conv_general_dilated(
            x, w, (1, 1), "SAME",
            dimension_numbers=("NCHW", "OIHW", "NCHW"),
            precision=jax.lax.Precision.HIGHEST)
        mean = y.mean(axis=(0, 2, 3), keepdims=True)
        var = ((y - mean) ** 2).mean(axis=(0, 2, 3), keepdims=True)
        y = (y - mean) * jax.lax.rsqrt(var + BN_EPS)
        y = y * g[None, :, None, None] + b[None, :, None, None]
        return jnp.maximum(y, 0.0)

    h = conv_bn_relu(x, tp["w1"], tp["g1"], tp["b1"])
    return conv_bn_relu(h, tp["w2"], tp["g2"], tp["b2"])


def make_params(key, C):
    ks = jax.random.split(key, 7)
    # torch layouts
    wt = 0.1 * jax.random.normal(ks[0], (C, C, 2, 2), jnp.float32)      # (in,out,kH,kW)
    bt = 0.1 * jax.random.normal(ks[1], (C,), jnp.float32)
    w1 = 0.1 * jax.random.normal(ks[2], (C, 2 * C, 3, 3), jnp.float32)  # (out,in,kH,kW)
    w2 = 0.1 * jax.random.normal(ks[3], (C // 2, C, 3, 3), jnp.float32)
    g1 = 1.0 + 0.1 * jax.random.normal(ks[4], (C,), jnp.float32)
    b1 = 0.1 * jax.random.normal(ks[5], (C,), jnp.float32)
    g2 = 1.0 + 0.1 * jax.random.normal(ks[6], (C // 2,), jnp.float32)
    b2 = jnp.zeros((C // 2,), jnp.float32)
    torch_params = dict(wt=wt, bt=bt, w1=w1, g1=g1, b1=b1, w2=w2, g2=g2, b2=b2)

    kernel_params = dict(
        # deconv weight rows ordered (row-parity, col-parity, out-ch); cols = in-ch
        wdec=jnp.transpose(wt, (2, 3, 1, 0)).reshape(4 * C, C).astype(jnp.bfloat16),
        bdec=bt.reshape(C, 1).astype(jnp.float32),
        # folded-tap conv weights, columns ordered (kh, kw, in-channel)
        w1k=jnp.transpose(w1, (0, 2, 3, 1)).reshape(C, 9 * 2 * C).astype(jnp.bfloat16),
        w2k=jnp.transpose(w2, (0, 2, 3, 1)).reshape(C // 2, 9 * C).astype(jnp.bfloat16),
        g1=g1, b1=b1, g2=g2, b2=b2,
    )
    return torch_params, kernel_params


if __name__ == "__main__":
    key = jax.random.PRNGKey(0)
    k1, k2, kp = jax.random.split(key, 3)

    B, C, H, W = 2, 4, 8, 8                   # in_channels = 4
    x1 = jax.random.normal(k1, (B, C, H, W), jnp.float32)          # low-res feature
    x2 = jax.random.normal(k2, (B, C, 2 * H, 2 * W), jnp.float32)  # skip connection

    torch_p, kern_p = make_params(kp, C)

    fwd = jax.jit(lambda a, b: up_forward(a, b, kern_p))
    out = jax.block_until_ready(fwd(x1, x2))
    assert out.shape == (B, C // 2, 2 * H, 2 * W), out.shape

    ref = ref_forward(x1, x2, torch_p)
    err = float(jnp.max(jnp.abs(out - ref)))
    # bf16 MXU inputs + bf16 y1 intermediate vs an f32 HIGHEST reference,
    # amplified by the two BatchNorm rsqrt normalizations -> loose tolerance.
    if not jnp.allclose(out, ref, rtol=5e-2, atol=5e-2):
        raise AssertionError(f"mismatch: max abs err {err}")

    print("KERNEL_OK")
</pallas_src>

<mosaic_0001>
module attributes {stable_mosaic.version = 11 : i64} {
  func.func @kernel(%arg0: i32, %arg1: i32, %arg2: memref<1x4x128xbf16, #tpu.memory_space<vmem>>, %arg3: memref<1x4x256xbf16, #tpu.memory_space<vmem>>, %arg4: memref<1x4x128xbf16, #tpu.memory_space<vmem>>, %arg5: memref<1x4x128xbf16, #tpu.memory_space<vmem>>, %arg6: memref<1x4x256xbf16, #tpu.memory_space<vmem>>, %arg7: memref<1x4x128xbf16, #tpu.memory_space<vmem>>, %arg8: memref<4x72xbf16, #tpu.memory_space<vmem>>, %arg9: memref<16x4xbf16, #tpu.memory_space<vmem>>, %arg10: memref<4x1xf32, #tpu.memory_space<vmem>>, %arg11: memref<4x288xf32, #tpu.memory_space<vmem>>, %arg12: memref<2x256xf32, #tpu.memory_space<vmem>>, %arg13: memref<1x4x256xbf16, #tpu.memory_space<vmem>>, %arg14: memref<1x1x4x2xf32, #tpu.memory_space<vmem>>) attributes {dimension_semantics = [#tpu.dimension_semantics<parallel>, #tpu.dimension_semantics<parallel>], iteration_bounds = array<i64: 2, 1>, scalar_prefetch = 0 : i64, scratch_operands = 0 : i64, tpu.core_type = #tpu.core_type<tc>, window_params = [{transform_indices = @transform_0, window_bounds = array<i64: 1, 4, 128>}, {transform_indices = @transform_1, window_bounds = array<i64: 1, 4, 256>}, {transform_indices = @transform_2, window_bounds = array<i64: 1, 4, 128>}, {transform_indices = @transform_3, window_bounds = array<i64: 1, 4, 128>}, {transform_indices = @transform_4, window_bounds = array<i64: 1, 4, 256>}, {transform_indices = @transform_5, window_bounds = array<i64: 1, 4, 128>}, {pipeline_mode = #tpu.pipeline_mode<synchronous>, transform_indices = @transform_6, window_bounds = array<i64: 4, 72>}, {pipeline_mode = #tpu.pipeline_mode<synchronous>, transform_indices = @transform_7, window_bounds = array<i64: 16, 4>}, {pipeline_mode = #tpu.pipeline_mode<synchronous>, transform_indices = @transform_8, window_bounds = array<i64: 4, 1>}, {pipeline_mode = #tpu.pipeline_mode<synchronous>, transform_indices = @transform_9, window_bounds = array<i64: 4, 288>}, {pipeline_mode = #tpu.pipeline_mode<synchronous>, transform_indices = @transform_10, window_bounds = array<i64: 2, 256>}, {transform_indices = @transform_11, window_bounds = array<i64: 1, 4, 256>}, {transform_indices = @transform_12, window_bounds = array<i64: 1, 1, 4, 2>}]} {
    %c0_i32 = arith.constant 0 : i32
    %0 = arith.cmpi sgt, %arg1, %c0_i32 : i32
    %cst = arith.constant 1.000000e+00 : f32
    %cst_0 = arith.constant 0.000000e+00 : f32
    %1 = arith.select %0, %cst, %cst_0 : f32
    %c0_i32_1 = arith.constant 0 : i32
    %2 = arith.cmpi slt, %arg1, %c0_i32_1 : i32
    %cst_2 = arith.constant 1.000000e+00 : f32
    %cst_3 = arith.constant 0.000000e+00 : f32
    %3 = arith.select %2, %cst_2, %cst_3 : f32
    %4 = tpu.iota {dimensions = array<i32: 1>} : vector<1x288xi32>
    %c16_i32 = arith.constant 16 : i32
    %5 = vector.broadcast %c16_i32 : i32 to vector<1x288xi32>
    %6 = arith.cmpi slt, %4, %5 : vector<1x288xi32>
    %cst_4 = arith.constant 1.000000e+00 : f32
    %7 = vector.broadcast %1 : f32 to vector<1x288xf32>
    %8 = vector.broadcast %cst_4 : f32 to vector<1x288xf32>
    %9 = arith.select %6, %7, %8 : vector<1x288xi1>, vector<1x288xf32>
    %c272_i32 = arith.constant 272 : i32
    %10 = vector.broadcast %c272_i32 : i32 to vector<1x288xi32>
    %11 = arith.cmpi sge, %4, %10 : vector<1x288xi32>
    %cst_5 = arith.constant 1.000000e+00 : f32
    %12 = vector.broadcast %3 : f32 to vector<1x288xf32>
    %13 = vector.broadcast %cst_5 : f32 to vector<1x288xf32>
    %14 = arith.select %11, %12, %13 : vector<1x288xi1>, vector<1x288xf32>
    %15 = arith.mulf %9, %14 : vector<1x288xf32>
    %c0 = arith.constant 0 : index
    %c0_6 = arith.constant 0 : index
    %c112 = arith.constant 112 : index
    %16 = vector.load %arg2[%c0, %c0_6, %c112] : memref<1x4x128xbf16, #tpu.memory_space<vmem>>, vector<1x4x16xbf16>
    %17 = vector.shape_cast %16 : vector<1x4x16xbf16> to vector<4x16xbf16>
    %c0_7 = arith.constant 0 : index
    %c0_8 = arith.constant 0 : index
    %c0_9 = arith.constant 0 : index
    %18 = vector.load %arg3[%c0_7, %c0_8, %c0_9] : memref<1x4x256xbf16, #tpu.memory_space<vmem>>, vector<1x4x256xbf16>
    %19 = vector.shape_cast %18 : vector<1x4x256xbf16> to vector<4x256xbf16>
    %c0_10 = arith.constant 0 : index
    %c0_11 = arith.constant 0 : index
    %c0_12 = arith.constant 0 : index
    %20 = vector.load %arg4[%c0_10, %c0_11, %c0_12] : memref<1x4x128xbf16, #tpu.memory_space<vmem>>, vector<1x4x16xbf16>
    %21 = vector.shape_cast %20 : vector<1x4x16xbf16> to vector<4x16xbf16>
    %22 = tpu.concatenate %17, %19, %21 in 1 : vector<4x16xbf16>, vector<4x256xbf16>, vector<4x16xbf16> -> vector<4x288xbf16>
    %23 = arith.extf %22 : vector<4x288xbf16> to vector<4x288xf32>
    %24 = vector.broadcast %15 : vector<1x288xf32> to vector<4x288xf32>
    %25 = arith.mulf %23, %24 : vector<4x288xf32>
    %c0_13 = arith.constant 0 : index
    %c0_14 = arith.constant 0 : index
    %c112_15 = arith.constant 112 : index
    %26 = vector.load %arg5[%c0_13, %c0_14, %c112_15] : memref<1x4x128xbf16, #tpu.memory_space<vmem>>, vector<1x4x16xbf16>
    %27 = vector.shape_cast %26 : vector<1x4x16xbf16> to vector<4x16xbf16>
    %c0_16 = arith.constant 0 : index
    %c0_17 = arith.constant 0 : index
    %c0_18 = arith.constant 0 : index
    %28 = vector.load %arg6[%c0_16, %c0_17, %c0_18] : memref<1x4x256xbf16, #tpu.memory_space<vmem>>, vector<1x4x256xbf16>
    %29 = vector.shape_cast %28 : vector<1x4x256xbf16> to vector<4x256xbf16>
    %c0_19 = arith.constant 0 : index
    %c0_20 = arith.constant 0 : index
    %c0_21 = arith.constant 0 : index
    %30 = vector.load %arg7[%c0_19, %c0_20, %c0_21] : memref<1x4x128xbf16, #tpu.memory_space<vmem>>, vector<1x4x16xbf16>
    %31 = vector.shape_cast %30 : vector<1x4x16xbf16> to vector<4x16xbf16>
    %32 = tpu.concatenate %27, %29, %31 in 1 : vector<4x16xbf16>, vector<4x256xbf16>, vector<4x16xbf16> -> vector<4x288xbf16>
    %c0_22 = arith.constant 0 : index
    %c0_23 = arith.constant 0 : index
    %33 = vector.load %arg9[%c0_22, %c0_23] : memref<16x4xbf16, #tpu.memory_space<vmem>>, vector<16x4xbf16>
    %cst_24 = arith.constant dense<0.000000e+00> : vector<16x288xf32>
    %34 = tpu.matmul %33, %32, %cst_24 {dimension_numbers = #tpu.dot_dimension_numbers<[1], [0], [0], [1], [0, 0, 1, 1], [], []>} : vector<16x4xbf16>, vector<4x288xbf16>, vector<16x288xf32> -> vector<16x288xf32>
    %c0_25 = arith.constant 0 : index
    %c0_26 = arith.constant 0 : index
    %35 = vector.load %arg11[%c0_25, %c0_26] : memref<4x288xf32, #tpu.memory_space<vmem>>, vector<4x288xf32>
    %cst_27 = arith.constant 0.000000e+00 : f32
    %36 = vector.broadcast %cst_27 : f32 to vector<4x288xf32>
    %37 = vector.extract_strided_slice %35 {offsets = [0, 0], sizes = [1, 288], strides = [1, 1]} : vector<4x288xf32> to vector<1x288xf32>
    %38 = vector.extract_strided_slice %34 {offsets = [0, 0], sizes = [4, 288], strides = [1, 1]} : vector<16x288xf32> to vector<4x288xf32>
    %39 = vector.broadcast %37 : vector<1x288xf32> to vector<4x288xf32>
    %40 = arith.mulf %39, %38 : vector<4x288xf32>
    %41 = arith.addf %36, %40 : vector<4x288xf32>
    %42 = vector.extract_strided_slice %35 {offsets = [1, 0], sizes = [1, 288], strides = [1, 1]} : vector<4x288xf32> to vector<1x288xf32>
    %43 = vector.extract_strided_slice %34 {offsets = [4, 0], sizes = [4, 288], strides = [1, 1]} : vector<16x288xf32> to vector<4x288xf32>
    %44 = vector.broadcast %42 : vector<1x288xf32> to vector<4x288xf32>
    %45 = arith.mulf %44, %43 : vector<4x288xf32>
    %46 = arith.addf %41, %45 : vector<4x288xf32>
    %47 = vector.extract_strided_slice %35 {offsets = [2, 0], sizes = [1, 288], strides = [1, 1]} : vector<4x288xf32> to vector<1x288xf32>
    %48 = vector.extract_strided_slice %34 {offsets = [8, 0], sizes = [4, 288], strides = [1, 1]} : vector<16x288xf32> to vector<4x288xf32>
    %49 = vector.broadcast %47 : vector<1x288xf32> to vector<4x288xf32>
    %50 = arith.mulf %49, %48 : vector<4x288xf32>
    %51 = arith.addf %46, %50 : vector<4x288xf32>
    %52 = vector.extract_strided_slice %35 {offsets = [3, 0], sizes = [1, 288], strides = [1, 1]} : vector<4x288xf32> to vector<1x288xf32>
    %53 = vector.extract_strided_slice %34 {offsets = [12, 0], sizes = [4, 288], strides = [1, 1]} : vector<16x288xf32> to vector<4x288xf32>
    %54 = vector.broadcast %52 : vector<1x288xf32> to vector<4x288xf32>
    %55 = arith.mulf %54, %53 : vector<4x288xf32>
    %56 = arith.addf %51, %55 : vector<4x288xf32>
    %c0_28 = arith.constant 0 : index
    %c0_29 = arith.constant 0 : index
    %57 = vector.load %arg10[%c0_28, %c0_29] : memref<4x1xf32, #tpu.memory_space<vmem>>, vector<4x1xf32>
    %58 = vector.broadcast %57 : vector<4x1xf32> to vector<4x288xf32>
    %59 = arith.addf %56, %58 : vector<4x288xf32>
    %60 = vector.broadcast %15 : vector<1x288xf32> to vector<4x288xf32>
    %61 = arith.mulf %59, %60 : vector<4x288xf32>
    %cst_30 = arith.constant 0.000000e+00 : f32
    %62 = vector.broadcast %cst_30 : f32 to vector<8x1xf32>
    %63 = tpu.concatenate %25, %61 in 0 : vector<4x288xf32>, vector<4x288xf32> -> vector<8x288xf32>
    %64 = tpu.concatenate %62, %63, %62 in 1 : vector<8x1xf32>, vector<8x288xf32>, vector<8x1xf32> -> vector<8x290xf32>
    %c0_31 = arith.constant 0 : index
    %c0_32 = arith.constant 0 : index
    %65 = vector.load %arg12[%c0_31, %c0_32] : memref<2x256xf32, #tpu.memory_space<vmem>>, vector<2x256xf32>
    %66 = vector.extract_strided_slice %65 {offsets = [0, 0], sizes = [1, 256], strides = [1, 1]} : vector<2x256xf32> to vector<1x256xf32>
    %67 = vector.extract_strided_slice %65 {offsets = [1, 0], sizes = [1, 256], strides = [1, 1]} : vector<2x256xf32> to vector<1x256xf32>
    %68 = vector.extract_strided_slice %64 {offsets = [0, 0], sizes = [8, 256], strides = [1, 1]} : vector<8x290xf32> to vector<8x256xf32>
    %69 = vector.broadcast %66 : vector<1x256xf32> to vector<8x256xf32>
    %70 = arith.mulf %68, %69 : vector<8x256xf32>
    %71 = vector.extract_strided_slice %64 {offsets = [0, 1], sizes = [8, 256], strides = [1, 1]} : vector<8x290xf32> to vector<8x256xf32>
    %72 = vector.extract_strided_slice %64 {offsets = [0, 2], sizes = [8, 256], strides = [1, 1]} : vector<8x290xf32> to vector<8x256xf32>
    %73 = vector.broadcast %67 : vector<1x256xf32> to vector<8x256xf32>
    %74 = arith.mulf %72, %73 : vector<8x256xf32>
    %75 = vector.extract_strided_slice %64 {offsets = [0, 16], sizes = [8, 256], strides = [1, 1]} : vector<8x290xf32> to vector<8x256xf32>
    %76 = vector.broadcast %66 : vector<1x256xf32> to vector<8x256xf32>
    %77 = arith.mulf %75, %76 : vector<8x256xf32>
    %78 = vector.extract_strided_slice %64 {offsets = [0, 17], sizes = [8, 256], strides = [1, 1]} : vector<8x290xf32> to vector<8x256xf32>
    %79 = vector.extract_strided_slice %64 {offsets = [0, 18], sizes = [8, 256], strides = [1, 1]} : vector<8x290xf32> to vector<8x256xf32>
    %80 = vector.broadcast %67 : vector<1x256xf32> to vector<8x256xf32>
    %81 = arith.mulf %79, %80 : vector<8x256xf32>
    %82 = vector.extract_strided_slice %64 {offsets = [0, 32], sizes = [8, 256], strides = [1, 1]} : vector<8x290xf32> to vector<8x256xf32>
    %83 = vector.broadcast %66 : vector<1x256xf32> to vector<8x256xf32>
    %84 = arith.mulf %82, %83 : vector<8x256xf32>
    %85 = vector.extract_strided_slice %64 {offsets = [0, 33], sizes = [8, 256], strides = [1, 1]} : vector<8x290xf32> to vector<8x256xf32>
    %86 = vector.extract_strided_slice %64 {offsets = [0, 34], sizes = [8, 256], strides = [1, 1]} : vector<8x290xf32> to vector<8x256xf32>
    %87 = vector.broadcast %67 : vector<1x256xf32> to vector<8x256xf32>
    %88 = arith.mulf %86, %87 : vector<8x256xf32>
    %89 = tpu.concatenate %70, %71, %74, %77, %78, %81, %84, %85, %88 in 0 : vector<8x256xf32>, vector<8x256xf32>, vector<8x256xf32>, vector<8x256xf32>, vector<8x256xf32>, vector<8x256xf32>, vector<8x256xf32>, vector<8x256xf32>, vector<8x256xf32> -> vector<72x256xf32>
    %90 = arith.truncf %89 : vector<72x256xf32> to vector<72x256xbf16>
    %c0_33 = arith.constant 0 : index
    %c0_34 = arith.constant 0 : index
    %91 = vector.load %arg8[%c0_33, %c0_34] : memref<4x72xbf16, #tpu.memory_space<vmem>>, vector<4x72xbf16>
    %cst_35 = arith.constant dense<0.000000e+00> : vector<4x256xf32>
    %92 = tpu.matmul %91, %90, %cst_35 {dimension_numbers = #tpu.dot_dimension_numbers<[1], [0], [0], [1], [0, 0, 1, 1], [], []>} : vector<4x72xbf16>, vector<72x256xbf16>, vector<4x256xf32> -> vector<4x256xf32>
    %93 = arith.truncf %92 : vector<4x256xf32> to vector<4x256xbf16>
    %c0_36 = arith.constant 0 : index
    %c0_37 = arith.constant 0 : index
    %c0_38 = arith.constant 0 : index
    %94 = vector.load %arg13[%c0_36, %c0_37, %c0_38] : memref<1x4x256xbf16, #tpu.memory_space<vmem>>, vector<1x4x256xbf16>
    %95 = vector.shape_cast %94 : vector<1x4x256xbf16> to vector<4x256xbf16>
    %96 = vector.shape_cast %93 : vector<4x256xbf16> to vector<1x4x256xbf16>
    tpu.vector_store %arg13[%c0_36, %c0_37, %c0_38], %96 {strides = array<i32>} : memref<1x4x256xbf16, #tpu.memory_space<vmem>>, vector<1x4x256xbf16>,
    %cst_39 = arith.constant dense<0.000000e+00> : vector<4xf32>
    %97 = vector.multi_reduction <add>, %92, %cst_39 [1] : vector<4x256xf32> to vector<4xf32>
    %98 = vector.shape_cast %97 : vector<4xf32> to vector<4x1xf32>
    %99 = arith.mulf %92, %92 : vector<4x256xf32>
    %cst_40 = arith.constant dense<0.000000e+00> : vector<4xf32>
    %100 = vector.multi_reduction <add>, %99, %cst_40 [1] : vector<4x256xf32> to vector<4xf32>
    %101 = vector.shape_cast %100 : vector<4xf32> to vector<4x1xf32>
    %102 = tpu.concatenate %98, %101 in 1 : vector<4x1xf32>, vector<4x1xf32> -> vector<4x2xf32>
    %c0_41 = arith.constant 0 : index
    %c0_42 = arith.constant 0 : index
    %c0_43 = arith.constant 0 : index
    %c0_44 = arith.constant 0 : index
    %103 = vector.load %arg14[%c0_41, %c0_42, %c0_43, %c0_44] : memref<1x1x4x2xf32, #tpu.memory_space<vmem>>, vector<1x1x4x2xf32>
    %104 = vector.shape_cast %103 : vector<1x1x4x2xf32> to vector<4x2xf32>
    %105 = vector.shape_cast %102 : vector<4x2xf32> to vector<1x1x4x2xf32>
    tpu.vector_store %arg14[%c0_41, %c0_42, %c0_43, %c0_44], %105 {strides = array<i32>} : memref<1x1x4x2xf32, #tpu.memory_space<vmem>>, vector<1x1x4x2xf32>,
    return
  }
  func.func @transform_0(%arg0: i32, %arg1: i32) -> (i32, i32, i32) {
    %c2_i32 = arith.constant 2 : i32
    %0 = arith.muli %arg1, %c2_i32 : i32
    %c1_i32 = arith.constant 1 : i32
    %1 = arith.subi %0, %c1_i32 : i32
    %c0_i32 = arith.constant 0 : i32
    %2 = arith.maxsi %1, %c0_i32 : i32
    %c0_i32_0 = arith.constant 0 : i32
    %c0_i32_1 = arith.constant 0 : i32
    return %arg0, %c0_i32_0, %2 : i32, i32, i32
  }
  func.func @transform_1(%arg0: i32, %arg1: i32) -> (i32, i32, i32) {
    %c0_i32 = arith.constant 0 : i32
    %c0_i32_0 = arith.constant 0 : i32
    return %arg0, %c0_i32, %arg1 : i32, i32, i32
  }
  func.func @transform_2(%arg0: i32, %arg1: i32) -> (i32, i32, i32) {
    %c1_i32 = arith.constant 1 : i32
    %0 = arith.addi %arg1, %c1_i32 : i32
    %c2_i32 = arith.constant 2 : i32
    %1 = arith.muli %0, %c2_i32 : i32
    %c1_i32_0 = arith.constant 1 : i32
    %2 = arith.minsi %1, %c1_i32_0 : i32
    %c0_i32 = arith.constant 0 : i32
    %c0_i32_1 = arith.constant 0 : i32
    return %arg0, %c0_i32, %2 : i32, i32, i32
  }
  func.func @transform_3(%arg0: i32, %arg1: i32) -> (i32, i32, i32) {
    %c2_i32 = arith.constant 2 : i32
    %0 = arith.muli %arg1, %c2_i32 : i32
    %c1_i32 = arith.constant 1 : i32
    %1 = arith.subi %0, %c1_i32 : i32
    %c0_i32 = arith.constant 0 : i32
    %2 = arith.maxsi %1, %c0_i32 : i32
    %c0_i32_0 = arith.constant 0 : i32
    %c0_i32_1 = arith.constant 0 : i32
    return %arg0, %c0_i32_0, %2 : i32, i32, i32
  }
  func.func @transform_4(%arg0: i32, %arg1: i32) -> (i32, i32, i32) {
    %c0_i32 = arith.constant 0 : i32
    %c0_i32_0 = arith.constant 0 : i32
    return %arg0, %c0_i32, %arg1 : i32, i32, i32
  }
  func.func @transform_5(%arg0: i32, %arg1: i32) -> (i32, i32, i32) {
    %c1_i32 = arith.constant 1 : i32
    %0 = arith.addi %arg1, %c1_i32 : i32
    %c2_i32 = arith.constant 2 : i32
    %1 = arith.muli %0, %c2_i32 : i32
    %c1_i32_0 = arith.constant 1 : i32
    %2 = arith.minsi %1, %c1_i32_0 : i32
    %c0_i32 = arith.constant 0 : i32
    %c0_i32_1 = arith.constant 0 : i32
    return %arg0, %c0_i32, %2 : i32, i32, i32
  }
  func.func @transform_6(%arg0: i32, %arg1: i32) -> (i32, i32) {
    %c0_i32 = arith.constant 0 : i32
    %c0_i32_0 = arith.constant 0 : i32
    %c0_i32_1 = arith.constant 0 : i32
    return %c0_i32, %c0_i32_0 : i32, i32
  }
  func.func @transform_7(%arg0: i32, %arg1: i32) -> (i32, i32) {
    %c0_i32 = arith.constant 0 : i32
    %c0_i32_0 = arith.constant 0 : i32
    %c0_i32_1 = arith.constant 0 : i32
    return %c0_i32, %c0_i32_0 : i32, i32
  }
  func.func @transform_8(%arg0: i32, %arg1: i32) -> (i32, i32) {
    %c0_i32 = arith.constant 0 : i32
    %c0_i32_0 = arith.constant 0 : i32
    %c0_i32_1 = arith.constant 0 : i32
    return %c0_i32, %c0_i32_0 : i32, i32
  }
  func.func @transform_9(%arg0: i32, %arg1: i32) -> (i32, i32) {
    %c0_i32 = arith.constant 0 : i32
    %c0_i32_0 = arith.constant 0 : i32
    %c0_i32_1 = arith.constant 0 : i32
    return %c0_i32, %c0_i32_0 : i32, i32
  }
  func.func @transform_10(%arg0: i32, %arg1: i32) -> (i32, i32) {
    %c0_i32 = arith.constant 0 : i32
    %c0_i32_0 = arith.constant 0 : i32
    %c0_i32_1 = arith.constant 0 : i32
    return %c0_i32, %c0_i32_0 : i32, i32
  }
  func.func @transform_11(%arg0: i32, %arg1: i32) -> (i32, i32, i32) {
    %c0_i32 = arith.constant 0 : i32
    %c0_i32_0 = arith.constant 0 : i32
    return %arg0, %c0_i32, %arg1 : i32, i32, i32
  }
  func.func @transform_12(%arg0: i32, %arg1: i32) -> (i32, i32, i32, i32) {
    %c0_i32 = arith.constant 0 : i32
    %c0_i32_0 = arith.constant 0 : i32
    %c0_i32_1 = arith.constant 0 : i32
    return %arg0, %arg1, %c0_i32, %c0_i32_0 : i32, i32, i32, i32
  }
}

module attributes {stable_mosaic.version = 11 : i64} {
  func.func @kernel(%arg0: i32, %arg1: i32, %arg2: memref<1x2x256xf32, #tpu.memory_space<vmem>>, %arg3: memref<2x1xf32, #tpu.memory_space<vmem>>, %arg4: memref<2x1xf32, #tpu.memory_space<vmem>>, %arg5: memref<1x2x256xf32, #tpu.memory_space<vmem>>) attributes {dimension_semantics = [#tpu.dimension_semantics<parallel>, #tpu.dimension_semantics<parallel>], iteration_bounds = array<i64: 2, 1>, scalar_prefetch = 0 : i64, scratch_operands = 0 : i64, tpu.core_type = #tpu.core_type<tc>, window_params = [{transform_indices = @transform_0, window_bounds = array<i64: 1, 2, 256>}, {pipeline_mode = #tpu.pipeline_mode<synchronous>, transform_indices = @transform_1, window_bounds = array<i64: 2, 1>}, {pipeline_mode = #tpu.pipeline_mode<synchronous>, transform_indices = @transform_2, window_bounds = array<i64: 2, 1>}, {transform_indices = @transform_3, window_bounds = array<i64: 1, 2, 256>}]} {
    %c0 = arith.constant 0 : index
    %c0_0 = arith.constant 0 : index
    %c0_1 = arith.constant 0 : index
    %0 = vector.load %arg2[%c0, %c0_0, %c0_1] : memref<1x2x256xf32, #tpu.memory_space<vmem>>, vector<1x2x256xf32>
    %1 = vector.shape_cast %0 : vector<1x2x256xf32> to vector<2x256xf32>
    %c0_2 = arith.constant 0 : index
    %c0_3 = arith.constant 0 : index
    %2 = vector.load %arg3[%c0_2, %c0_3] : memref<2x1xf32, #tpu.memory_space<vmem>>, vector<2x1xf32>
    %3 = vector.broadcast %2 : vector<2x1xf32> to vector<2x256xf32>
    %4 = arith.mulf %1, %3 : vector<2x256xf32>
    %c0_4 = arith.constant 0 : index
    %c0_5 = arith.constant 0 : index
    %5 = vector.load %arg4[%c0_4, %c0_5] : memref<2x1xf32, #tpu.memory_space<vmem>>, vector<2x1xf32>
    %6 = vector.broadcast %5 : vector<2x1xf32> to vector<2x256xf32>
    %7 = arith.addf %4, %6 : vector<2x256xf32>
    %cst = arith.constant 0.000000e+00 : f32
    %8 = vector.broadcast %cst : f32 to vector<2x256xf32>
    %9 = arith.maximumf %7, %8 : vector<2x256xf32>
    %c0_6 = arith.constant 0 : index
    %c0_7 = arith.constant 0 : index
    %c0_8 = arith.constant 0 : index
    %10 = vector.load %arg5[%c0_6, %c0_7, %c0_8] : memref<1x2x256xf32, #tpu.memory_space<vmem>>, vector<1x2x256xf32>
    %11 = vector.shape_cast %10 : vector<1x2x256xf32> to vector<2x256xf32>
    %12 = vector.shape_cast %9 : vector<2x256xf32> to vector<1x2x256xf32>
    tpu.vector_store %arg5[%c0_6, %c0_7, %c0_8], %12 {strides = array<i32>} : memref<1x2x256xf32, #tpu.memory_space<vmem>>, vector<1x2x256xf32>,
    return
  }
  func.func @transform_0(%arg0: i32, %arg1: i32) -> (i32, i32, i32) {
    %c0_i32 = arith.constant 0 : i32
    %c0_i32_0 = arith.constant 0 : i32
    return %arg0, %c0_i32, %arg1 : i32, i32, i32
  }
  func.func @transform_1(%arg0: i32, %arg1: i32) -> (i32, i32) {
    %c0_i32 = arith.constant 0 : i32
    %c0_i32_0 = arith.constant 0 : i32
    %c0_i32_1 = arith.constant 0 : i32
    return %c0_i32, %c0_i32_0 : i32, i32
  }
  func.func @transform_2(%arg0: i32, %arg1: i32) -> (i32, i32) {
    %c0_i32 = arith.constant 0 : i32
    %c0_i32_0 = arith.constant 0 : i32
    %c0_i32_1 = arith.constant 0 : i32
    return %c0_i32, %c0_i32_0 : i32, i32
  }
  func.func @transform_3(%arg0: i32, %arg1: i32) -> (i32, i32, i32) {
    %c0_i32 = arith.constant 0 : i32
    %c0_i32_0 = arith.constant 0 : i32
    return %arg0, %c0_i32, %arg1 : i32, i32, i32
  }
}

module attributes {stable_mosaic.version = 11 : i64} {
  func.func @kernel(%arg0: i32, %arg1: i32, %arg2: memref<1x4x128xbf16, #tpu.memory_space<vmem>>, %arg3: memref<1x4x256xbf16, #tpu.memory_space<vmem>>, %arg4: memref<1x4x128xbf16, #tpu.memory_space<vmem>>, %arg5: memref<2x36xbf16, #tpu.memory_space<vmem>>, %arg6: memref<4x1xf32, #tpu.memory_space<vmem>>, %arg7: memref<4x1xf32, #tpu.memory_space<vmem>>, %arg8: memref<2x256xf32, #tpu.memory_space<vmem>>, %arg9: memref<1x2x256xf32, #tpu.memory_space<vmem>>, %arg10: memref<1x1x2x2xf32, #tpu.memory_space<vmem>>) attributes {dimension_semantics = [#tpu.dimension_semantics<parallel>, #tpu.dimension_semantics<parallel>], iteration_bounds = array<i64: 2, 1>, scalar_prefetch = 0 : i64, scratch_operands = 0 : i64, tpu.core_type = #tpu.core_type<tc>, window_params = [{transform_indices = @transform_0, window_bounds = array<i64: 1, 4, 128>}, {transform_indices = @transform_1, window_bounds = array<i64: 1, 4, 256>}, {transform_indices = @transform_2, window_bounds = array<i64: 1, 4, 128>}, {pipeline_mode = #tpu.pipeline_mode<synchronous>, transform_indices = @transform_3, window_bounds = array<i64: 2, 36>}, {pipeline_mode = #tpu.pipeline_mode<synchronous>, transform_indices = @transform_4, window_bounds = array<i64: 4, 1>}, {pipeline_mode = #tpu.pipeline_mode<synchronous>, transform_indices = @transform_5, window_bounds = array<i64: 4, 1>}, {pipeline_mode = #tpu.pipeline_mode<synchronous>, transform_indices = @transform_6, window_bounds = array<i64: 2, 256>}, {transform_indices = @transform_7, window_bounds = array<i64: 1, 2, 256>}, {transform_indices = @transform_8, window_bounds = array<i64: 1, 1, 2, 2>}]} {
    %c0_i32 = arith.constant 0 : i32
    %0 = arith.cmpi sgt, %arg1, %c0_i32 : i32
    %cst = arith.constant 1.000000e+00 : f32
    %cst_0 = arith.constant 0.000000e+00 : f32
    %1 = arith.select %0, %cst, %cst_0 : f32
    %c0_i32_1 = arith.constant 0 : i32
    %2 = arith.cmpi slt, %arg1, %c0_i32_1 : i32
    %cst_2 = arith.constant 1.000000e+00 : f32
    %cst_3 = arith.constant 0.000000e+00 : f32
    %3 = arith.select %2, %cst_2, %cst_3 : f32
    %4 = tpu.iota {dimensions = array<i32: 1>} : vector<1x288xi32>
    %c16_i32 = arith.constant 16 : i32
    %5 = vector.broadcast %c16_i32 : i32 to vector<1x288xi32>
    %6 = arith.cmpi slt, %4, %5 : vector<1x288xi32>
    %cst_4 = arith.constant 1.000000e+00 : f32
    %7 = vector.broadcast %1 : f32 to vector<1x288xf32>
    %8 = vector.broadcast %cst_4 : f32 to vector<1x288xf32>
    %9 = arith.select %6, %7, %8 : vector<1x288xi1>, vector<1x288xf32>
    %c272_i32 = arith.constant 272 : i32
    %10 = vector.broadcast %c272_i32 : i32 to vector<1x288xi32>
    %11 = arith.cmpi sge, %4, %10 : vector<1x288xi32>
    %cst_5 = arith.constant 1.000000e+00 : f32
    %12 = vector.broadcast %3 : f32 to vector<1x288xf32>
    %13 = vector.broadcast %cst_5 : f32 to vector<1x288xf32>
    %14 = arith.select %11, %12, %13 : vector<1x288xi1>, vector<1x288xf32>
    %15 = arith.mulf %9, %14 : vector<1x288xf32>
    %c0 = arith.constant 0 : index
    %c0_6 = arith.constant 0 : index
    %c112 = arith.constant 112 : index
    %16 = vector.load %arg2[%c0, %c0_6, %c112] : memref<1x4x128xbf16, #tpu.memory_space<vmem>>, vector<1x4x16xbf16>
    %17 = vector.shape_cast %16 : vector<1x4x16xbf16> to vector<4x16xbf16>
    %c0_7 = arith.constant 0 : index
    %c0_8 = arith.constant 0 : index
    %c0_9 = arith.constant 0 : index
    %18 = vector.load %arg3[%c0_7, %c0_8, %c0_9] : memref<1x4x256xbf16, #tpu.memory_space<vmem>>, vector<1x4x256xbf16>
    %19 = vector.shape_cast %18 : vector<1x4x256xbf16> to vector<4x256xbf16>
    %c0_10 = arith.constant 0 : index
    %c0_11 = arith.constant 0 : index
    %c0_12 = arith.constant 0 : index
    %20 = vector.load %arg4[%c0_10, %c0_11, %c0_12] : memref<1x4x128xbf16, #tpu.memory_space<vmem>>, vector<1x4x16xbf16>
    %21 = vector.shape_cast %20 : vector<1x4x16xbf16> to vector<4x16xbf16>
    %22 = tpu.concatenate %17, %19, %21 in 1 : vector<4x16xbf16>, vector<4x256xbf16>, vector<4x16xbf16> -> vector<4x288xbf16>
    %23 = arith.extf %22 : vector<4x288xbf16> to vector<4x288xf32>
    %c0_13 = arith.constant 0 : index
    %c0_14 = arith.constant 0 : index
    %24 = vector.load %arg6[%c0_13, %c0_14] : memref<4x1xf32, #tpu.memory_space<vmem>>, vector<4x1xf32>
    %25 = vector.broadcast %24 : vector<4x1xf32> to vector<4x288xf32>
    %26 = arith.mulf %23, %25 : vector<4x288xf32>
    %c0_15 = arith.constant 0 : index
    %c0_16 = arith.constant 0 : index
    %27 = vector.load %arg7[%c0_15, %c0_16] : memref<4x1xf32, #tpu.memory_space<vmem>>, vector<4x1xf32>
    %28 = vector.broadcast %27 : vector<4x1xf32> to vector<4x288xf32>
    %29 = arith.addf %26, %28 : vector<4x288xf32>
    %cst_17 = arith.constant 0.000000e+00 : f32
    %30 = vector.broadcast %cst_17 : f32 to vector<4x288xf32>
    %31 = arith.maximumf %29, %30 : vector<4x288xf32>
    %32 = vector.broadcast %15 : vector<1x288xf32> to vector<4x288xf32>
    %33 = arith.mulf %31, %32 : vector<4x288xf32>
    %cst_18 = arith.constant 0.000000e+00 : f32
    %34 = vector.broadcast %cst_18 : f32 to vector<4x1xf32>
    %35 = tpu.concatenate %34, %33, %34 in 1 : vector<4x1xf32>, vector<4x288xf32>, vector<4x1xf32> -> vector<4x290xf32>
    %c0_19 = arith.constant 0 : index
    %c0_20 = arith.constant 0 : index
    %36 = vector.load %arg8[%c0_19, %c0_20] : memref<2x256xf32, #tpu.memory_space<vmem>>, vector<2x256xf32>
    %37 = vector.extract_strided_slice %36 {offsets = [0, 0], sizes = [1, 256], strides = [1, 1]} : vector<2x256xf32> to vector<1x256xf32>
    %38 = vector.extract_strided_slice %36 {offsets = [1, 0], sizes = [1, 256], strides = [1, 1]} : vector<2x256xf32> to vector<1x256xf32>
    %39 = vector.extract_strided_slice %35 {offsets = [0, 0], sizes = [4, 256], strides = [1, 1]} : vector<4x290xf32> to vector<4x256xf32>
    %40 = vector.broadcast %37 : vector<1x256xf32> to vector<4x256xf32>
    %41 = arith.mulf %39, %40 : vector<4x256xf32>
    %42 = vector.extract_strided_slice %35 {offsets = [0, 1], sizes = [4, 256], strides = [1, 1]} : vector<4x290xf32> to vector<4x256xf32>
    %43 = vector.extract_strided_slice %35 {offsets = [0, 2], sizes = [4, 256], strides = [1, 1]} : vector<4x290xf32> to vector<4x256xf32>
    %44 = vector.broadcast %38 : vector<1x256xf32> to vector<4x256xf32>
    %45 = arith.mulf %43, %44 : vector<4x256xf32>
    %46 = vector.extract_strided_slice %35 {offsets = [0, 16], sizes = [4, 256], strides = [1, 1]} : vector<4x290xf32> to vector<4x256xf32>
    %47 = vector.broadcast %37 : vector<1x256xf32> to vector<4x256xf32>
    %48 = arith.mulf %46, %47 : vector<4x256xf32>
    %49 = vector.extract_strided_slice %35 {offsets = [0, 17], sizes = [4, 256], strides = [1, 1]} : vector<4x290xf32> to vector<4x256xf32>
    %50 = vector.extract_strided_slice %35 {offsets = [0, 18], sizes = [4, 256], strides = [1, 1]} : vector<4x290xf32> to vector<4x256xf32>
    %51 = vector.broadcast %38 : vector<1x256xf32> to vector<4x256xf32>
    %52 = arith.mulf %50, %51 : vector<4x256xf32>
    %53 = vector.extract_strided_slice %35 {offsets = [0, 32], sizes = [4, 256], strides = [1, 1]} : vector<4x290xf32> to vector<4x256xf32>
    %54 = vector.broadcast %37 : vector<1x256xf32> to vector<4x256xf32>
    %55 = arith.mulf %53, %54 : vector<4x256xf32>
    %56 = vector.extract_strided_slice %35 {offsets = [0, 33], sizes = [4, 256], strides = [1, 1]} : vector<4x290xf32> to vector<4x256xf32>
    %57 = vector.extract_strided_slice %35 {offsets = [0, 34], sizes = [4, 256], strides = [1, 1]} : vector<4x290xf32> to vector<4x256xf32>
    %58 = vector.broadcast %38 : vector<1x256xf32> to vector<4x256xf32>
    %59 = arith.mulf %57, %58 : vector<4x256xf32>
    %60 = tpu.concatenate %41, %42, %45, %48, %49, %52, %55, %56, %59 in 0 : vector<4x256xf32>, vector<4x256xf32>, vector<4x256xf32>, vector<4x256xf32>, vector<4x256xf32>, vector<4x256xf32>, vector<4x256xf32>, vector<4x256xf32>, vector<4x256xf32> -> vector<36x256xf32>
    %61 = arith.truncf %60 : vector<36x256xf32> to vector<36x256xbf16>
    %c0_21 = arith.constant 0 : index
    %c0_22 = arith.constant 0 : index
    %62 = vector.load %arg5[%c0_21, %c0_22] : memref<2x36xbf16, #tpu.memory_space<vmem>>, vector<2x36xbf16>
    %cst_23 = arith.constant dense<0.000000e+00> : vector<2x256xf32>
    %63 = tpu.matmul %62, %61, %cst_23 {dimension_numbers = #tpu.dot_dimension_numbers<[1], [0], [0], [1], [0, 0, 1, 1], [], []>} : vector<2x36xbf16>, vector<36x256xbf16>, vector<2x256xf32> -> vector<2x256xf32>
    %c0_24 = arith.constant 0 : index
    %c0_25 = arith.constant 0 : index
    %c0_26 = arith.constant 0 : index
    %64 = vector.load %arg9[%c0_24, %c0_25, %c0_26] : memref<1x2x256xf32, #tpu.memory_space<vmem>>, vector<1x2x256xf32>
    %65 = vector.shape_cast %64 : vector<1x2x256xf32> to vector<2x256xf32>
    %66 = vector.shape_cast %63 : vector<2x256xf32> to vector<1x2x256xf32>
    tpu.vector_store %arg9[%c0_24, %c0_25, %c0_26], %66 {strides = array<i32>} : memref<1x2x256xf32, #tpu.memory_space<vmem>>, vector<1x2x256xf32>,
    %cst_27 = arith.constant dense<0.000000e+00> : vector<2xf32>
    %67 = vector.multi_reduction <add>, %63, %cst_27 [1] : vector<2x256xf32> to vector<2xf32>
    %68 = vector.shape_cast %67 : vector<2xf32> to vector<2x1xf32>
    %69 = arith.mulf %63, %63 : vector<2x256xf32>
    %cst_28 = arith.constant dense<0.000000e+00> : vector<2xf32>
    %70 = vector.multi_reduction <add>, %69, %cst_28 [1] : vector<2x256xf32> to vector<2xf32>
    %71 = vector.shape_cast %70 : vector<2xf32> to vector<2x1xf32>
    %72 = tpu.concatenate %68, %71 in 1 : vector<2x1xf32>, vector<2x1xf32> -> vector<2x2xf32>
    %c0_29 = arith.constant 0 : index
    %c0_30 = arith.constant 0 : index
    %c0_31 = arith.constant 0 : index
    %c0_32 = arith.constant 0 : index
    %73 = vector.load %arg10[%c0_29, %c0_30, %c0_31, %c0_32] : memref<1x1x2x2xf32, #tpu.memory_space<vmem>>, vector<1x1x2x2xf32>
    %74 = vector.shape_cast %73 : vector<1x1x2x2xf32> to vector<2x2xf32>
    %75 = vector.shape_cast %72 : vector<2x2xf32> to vector<1x1x2x2xf32>
    tpu.vector_store %arg10[%c0_29, %c0_30, %c0_31, %c0_32], %75 {strides = array<i32>} : memref<1x1x2x2xf32, #tpu.memory_space<vmem>>, vector<1x1x2x2xf32>,
    return
  }
  func.func @transform_0(%arg0: i32, %arg1: i32) -> (i32, i32, i32) {
    %c2_i32 = arith.constant 2 : i32
    %0 = arith.muli %arg1, %c2_i32 : i32
    %c1_i32 = arith.constant 1 : i32
    %1 = arith.subi %0, %c1_i32 : i32
    %c0_i32 = arith.constant 0 : i32
    %2 = arith.maxsi %1, %c0_i32 : i32
    %c0_i32_0 = arith.constant 0 : i32
    %c0_i32_1 = arith.constant 0 : i32
    return %arg0, %c0_i32_0, %2 : i32, i32, i32
  }
  func.func @transform_1(%arg0: i32, %arg1: i32) -> (i32, i32, i32) {
    %c0_i32 = arith.constant 0 : i32
    %c0_i32_0 = arith.constant 0 : i32
    return %arg0, %c0_i32, %arg1 : i32, i32, i32
  }
  func.func @transform_2(%arg0: i32, %arg1: i32) -> (i32, i32, i32) {
    %c1_i32 = arith.constant 1 : i32
    %0 = arith.addi %arg1, %c1_i32 : i32
    %c2_i32 = arith.constant 2 : i32
    %1 = arith.muli %0, %c2_i32 : i32
    %c1_i32_0 = arith.constant 1 : i32
    %2 = arith.minsi %1, %c1_i32_0 : i32
    %c0_i32 = arith.constant 0 : i32
    %c0_i32_1 = arith.constant 0 : i32
    return %arg0, %c0_i32, %2 : i32, i32, i32
  }
  func.func @transform_3(%arg0: i32, %arg1: i32) -> (i32, i32) {
    %c0_i32 = arith.constant 0 : i32
    %c0_i32_0 = arith.constant 0 : i32
    %c0_i32_1 = arith.constant 0 : i32
    return %c0_i32, %c0_i32_0 : i32, i32
  }
  func.func @transform_4(%arg0: i32, %arg1: i32) -> (i32, i32) {
    %c0_i32 = arith.constant 0 : i32
    %c0_i32_0 = arith.constant 0 : i32
    %c0_i32_1 = arith.constant 0 : i32
    return %c0_i32, %c0_i32_0 : i32, i32
  }
  func.func @transform_5(%arg0: i32, %arg1: i32) -> (i32, i32) {
    %c0_i32 = arith.constant 0 : i32
    %c0_i32_0 = arith.constant 0 : i32
    %c0_i32_1 = arith.constant 0 : i32
    return %c0_i32, %c0_i32_0 : i32, i32
  }
  func.func @transform_6(%arg0: i32, %arg1: i32) -> (i32, i32) {
    %c0_i32 = arith.constant 0 : i32
    %c0_i32_0 = arith.constant 0 : i32
    %c0_i32_1 = arith.constant 0 : i32
    return %c0_i32, %c0_i32_0 : i32, i32
  }
  func.func @transform_7(%arg0: i32, %arg1: i32) -> (i32, i32, i32) {
    %c0_i32 = arith.constant 0 : i32
    %c0_i32_0 = arith.constant 0 : i32
    return %arg0, %c0_i32, %arg1 : i32, i32, i32
  }
  func.func @transform_8(%arg0: i32, %arg1: i32) -> (i32, i32, i32, i32) {
    %c0_i32 = arith.constant 0 : i32
    %c0_i32_0 = arith.constant 0 : i32
    %c0_i32_1 = arith.constant 0 : i32
    return %arg0, %arg1, %c0_i32, %c0_i32_0 : i32, i32, i32, i32
  }
}

</mosaic_0001>

<bundles_post_ra>
// kernel: _lambda_.5
= control target key start
LH: loop header
LB: loop body
LE: loop exit
PB: predicated region body
PF: predicated region fallthrough
CT: control target
= control target key end

     0   :  { %s408_s12 = smov 0   ;;  %s410_s13 = smov 0   ;;  %s447_s0 = inlined_call_operand.vmem [shape: f32[2,2,256], index: 0, kind: input, shape index: {}]   ;;  %s448_s1 = inlined_call_operand.vmem [shape: f32[2,1], index: 1, kind: input, shape index: {}]   ;;  %s449_s2 = inlined_call_operand.vmem [shape: f32[2,1], index: 2, kind: input, shape index: {}]   ;;  %s450_s3 = inlined_call_operand.vmem [shape: f32[2,2,256], index: 3, kind: output, shape index: {}]  }
   0x1   :  { %s412_s14 = smov 0  }
   0x2 LB: > { %s25_s15 = sadd.s32 1, %s380_s13  ;;  %p326_p0 = scmp.ge.s32.totalorder %s384_s14, 1  ;;  %s384_s14 = sphi %s412_s14, %s13_s14   ;;  %s380_s13 = sphi %s410_s13, %s452_s13   ;;  %s376_s12 = sphi %s408_s12, %s451_s12  }
   0x3   : > { %p27_p1 = scmp.ge.s32.totalorder %s25_s15, 2  ;;  %p158_p2 = scmp.lt.s32.totalorder %s384_s14, 3 }
   0x5   : > { %s454_s15 = smov (%p27_p1, %s25_s15), 0  ;;  %p159_p3 = pnand %p326_p0, %p158_p2 }
   0x6   : > { %p191_p4 = scmp.lt.s32.totalorder (!%p159_p3), %s376_s12, 1 }
   0x7   : > { %162 = sbr.rel (%p159_p3) target bundleno = 144 (0x90), region = 32 }
   0xc   : > { %v211_v0 = vld [vmem:[%s448_s1] sm:$0x3]  ;;  %v386_v1 = vmov 0   ;;  %s456_s12 = smov (!%p191_p4, %s376_s12), 1  ;;  %v387_v3 = vmov 269488144  }
   0xd   : > { %361 = vset.pattern.permute.xlu0 %v386_v1  ;;  %v222_v2 = vld [vmem:[%s449_s2] sm:$0x3]  ;;  %v217_v4 = vunpack.c.l.s4 %v387_v3  ;;  %s333_s20 = sshll.u32 %s456_s12, 2 }
   0xe   : > { %214 = vperm.xlu0 %361, %v211_v0   ;;  %s198_s23 = scalar_lea.vmem %s447_s0, %s333_s20  ;;  %s208_s26 = scalar_lea.vmem %s450_s3, %s333_s20 }
   0xf   : > { %v218_v6 = vunpack.c.0.s8 %v217_v4  ;;  %v210_v8 = vld [vmem:[%s198_s23] sm:$0xf] }
  0x16   : > { %225 = vperm.xlu0 %361, %v222_v2  }
  0x80   : > { %v215_v5 = vpop.permute.xlu0 %214 }
  0x81   : > { %v219_v7 = vperm.slane %v215_v5, %v218_v6 }
  0x83   : > { %v221_v10 = vmul.f32 %v219_v7, %v210_v8 }
  0x88   : > { %v226_v9 = vpop.permute.xlu0 %225 }
  0x89   : > { %v230_v11 = vperm.slane %v226_v9, %v218_v6 }
  0x8b   : > { %v232_v12 = vadd.f32 %v230_v11, %v221_v10 }
  0x8d   : > { %v233_v13 = vmax.f32 %v232_v12, 0.0 }
  0x8f   : > { %234 = vst [vmem:[%s208_s26] sm:$0xf] %v233_v13 }
  0x90 PF: > { %s13_s14 = sadd.s32 1, %s384_s14   ;;  %s451_s12 = smov %s380_s13 }
  0x91   : > { %p10_p5 = scmp.ge.s32.totalorder %s13_s14, 4   ;;  %s452_s13 = smov %s454_s15 }
  0x93   :  { %12 = sbr.rel (!%p10_p5) target bundleno = 2 (0x2), region = 62 }

// kernel: _lambda_.4
= control target key start
LH: loop header
LB: loop body
LE: loop exit
PB: predicated region body
PF: predicated region fallthrough
CT: control target
= control target key end

     0   :  { %s1212_s27 = smov 0   ;;  %s1214_s28 = smov 0   ;;  %s1365_s0 = inlined_call_operand.vmem [shape: bf16[2,4,256], index: 0, kind: input, shape index: {}, may-alias: {0,1,2}]   ;;  %s1366_s1 = inlined_call_operand.vmem [shape: bf16[2,4,256], index: 1, kind: input, shape index: {}, may-alias: {0,1,2}]   ;;  %s1367_s2 = inlined_call_operand.vmem [shape: bf16[2,4,256], index: 2, kind: input, shape index: {}, may-alias: {0,1,2}]   ;;  %s1368_s3 = inlined_call_operand.vmem [shape: bf16[2,36], index: 3, kind: input, shape index: {}]   ;;  %s1369_s4 = inlined_call_operand.vmem [shape: f32[4,1], index: 4, kind: input, shape index: {}]   ;;  %s1370_s5 = inlined_call_operand.vmem [shape: f32[4,1], index: 5, kind: input, shape index: {}]   ;;  %s1371_s6 = inlined_call_operand.vmem [shape: f32[2,256], index: 6, kind: input, shape index: {}]   ;;  %s1372_s7 = inlined_call_operand.vmem [shape: f32[2,2,256], index: 7, kind: output, shape index: {0}]   ;;  %s1373_s8 = inlined_call_operand.vmem [shape: f32[2,1,2,2], index: 8, kind: output, shape index: {1}]  }
   0x1   :  { %s1216_s29 = smov 0  }
   0x2 LB: > { %s31_s30 = sadd.s32 1, %s1145_s28  ;;  %p1025_p0 = scmp.ge.s32.totalorder %s1149_s29, 1  ;;  %s1149_s29 = sphi %s1216_s29, %s19_s29   ;;  %s1145_s28 = sphi %s1214_s28, %s1375_s28   ;;  %s1141_s27 = sphi %s1212_s27, %s1374_s27  }
   0x3   : > { %p33_p1 = scmp.ge.s32.totalorder %s31_s30, 2  ;;  %p350_p2 = scmp.lt.s32.totalorder %s1149_s29, 3 }
   0x5   : > { %s1377_s30 = smov (%p33_p1, %s31_s30), 0  ;;  %p351_p3 = pnand %p1025_p0, %p350_p2 }
   0x6   : > { %p427_p4 = scmp.lt.s32.totalorder (!%p351_p3), %s1141_s27, 1  ;;  %s1152_s23 = smov (!%p351_p3), 16  }
   0x7   : > { %354 = sbr.rel (%p351_p3) target bundleno = 687 (0x2af), region = 48  ;;  %s1153_s9 = smov (!%p351_p3), 18  }
   0x8   : > { %s1154_s10 = smov (!%p351_p3), 34   ;;  %s1155_s12 = smov (!%p351_p3), 32  }
   0x9   : > { %s1157_s13 = smov (!%p351_p3), 1   ;;  %s1159_s15 = smov (!%p351_p3), 111  }
   0xa   : > { %s1160_s16 = smov (!%p351_p3), 127   ;;  %s1161_s17 = smov (!%p351_p3), 94  }
   0xb   : > { %s1162_s18 = smov (!%p351_p3), 95   ;;  %s1164_s20 = smov (!%p351_p3), 110  }
   0xc   : > { %v548_v0 = vld [vmem:[%s1369_s4] sm:$0xf]  ;;  %v1151_v1 = vmov 0   ;;  %s1379_s27 = smov (!%p427_p4, %s1141_s27), 1  ;;  %v487_v21 = vlaneseq  ;;  %vm527_vm0 = vcmask 130048   ;;  %v1156_v34 = vmov 1.0  }
   0xd   : > { %1085 = vset.pattern.permute.xlu2 %v1151_v1  ;;  %1126 = vset.pattern.permute.xlu0 %v1151_v1  ;;  %s1236_s11 = sshll.u32 %s1379_s27, 2  ;;  %v557_v3 = vld [vmem:[%s1370_s5] sm:$0xf]  ;;  %vm581_vm3 = vcmask 7168   ;;  %vm661_vm4 = vcmask 277504   ;;  %vm637_vm5 = vcmask 146432  }
   0xe   : > { %551 = vperm.xlu2 %1085, %v548_v0   ;;  %s434_s14 = scalar_lea.vmem %s1365_s0, %s1236_s11  ;;  %s447_s19 = scalar_lea.vmem %s1366_s1, %s1236_s11  ;;  %v590_v4 = vld [vmem:[%s1371_s6] sm:$0xf]  ;;  %v488_v24 = vand.u32 127, %v487_v21  ;;  %vm649_vm6 = vcmask 261120   ;;  %vm588_vm7 = vcmask 269312   ;;  %vm612_vm8 = vcmask 15360  }
   0xf   : > { %v508_v2 = vld [vmem:[%s434_s14] sm:$0x3]  ;;  %v600_v6 = vperm.slane %v590_v4, 1  ;;  %s1042_s22 = sadd.s32 2, %s1236_s11  ;;  %v601_v12 = vperm.slane %v590_v4, 3  ;;  %v592_v15 = vperm.slane %v590_v4, 0 }
  0x10   : > { %512 = vst [vmem:[#allocation1] ss:$4 sm:$0xff] %v508_v2  ;;  %v509_v5 = vld [vmem:[%s447_s19] sm:$0xf]  ;;  %s460_s26 = scalar_lea.vmem %s1367_s2, %s1042_s22  ;;  %v593_v17 = vperm.slane %v590_v4, 2  ;;  %vm491_vm1 = vcmp.lt.s32.totalorder %v488_v24, 16 }
  0x11   : > { %v604_v8 = vperm.slane %v600_v6, 1  ;;  %v510_v9 = vld [vmem:[%s460_s26] sm:$0x3]  ;;  %v605_v13 = vperm.slane %v601_v12, 1  ;;  %v1260_v16 = vperm.slane %v592_v15, 0  ;;  %v495_v35 = vsel %vm491_vm1, 0.0, %v1156_v34 }
  0x12   : > { %v1263_v18 = vperm.slane %v593_v17, 0  ;;  %v490_v39 = vadd.s32 256, %v488_v24  ;;  %s1158_s14 = smov 2   ;;  %s1163_s19 = smov 96   ;;  %vm778_vm9 = vcmask 769024   ;;  %vm803_vm10 = vcmask 1041408  }
  0x13   : > { %s1165_s21 = smov 126   ;;  %s1166_s22 = smov 112   ;;  %vm722_vm11 = vcmask 908288   ;;  %vm739_vm12 = vcmask 900096   ;;  %vm753_vm13 = vcmask 785408   ;;  %vm764_vm14 = vcmask 777216  }
  0x14   : > { %vm500_vm2 = vcmp.ge.s32.totalorder %v490_v39, 272  ;;  %vm783_vm15 = vcmask 1043456   ;;  %vm694_vm1 = vcmask 1031168  }
  0x15   : > { %v504_v45 = vsel %vm500_vm2, 0.0, %v1156_v34  ;;  %vm711_vm2 = vcmask 916480  }
  0x16   : > { %560 = vperm.xlu2 %1085, %v557_v3  }
  0x17   : > { %v513_v7 = vld.sshfl [vmem:[#allocation1] sm:$0xff pattern:$0x73625140] }
  0x18   : > { %515 = vrot.lane.b32.xlu1 %v513_v7, %s1152_s23  ;;  %518 = vst [vmem:[#allocation1] ss:$4 sm:$0xff] %v509_v5 }
  0x1e   : > { %633 = vrot.lane.b32.xlu2 %v604_v8, %s1153_s9 }
  0x1f   : > { %v521_v10 = vld.sshfl [vmem:[#allocation1 + $0x8] sm:$0xff pattern:$0x73625140]  ;;  %v519_v11 = vld.sshfl [vmem:[#allocation1] sm:$0xff pattern:$0x73625140] }
  0x20   : > { %525 = vrot.lane.b32.xlu0 %v521_v10, %s1152_s23  ;;  %523 = vrot.lane.b32.xlu1 %v519_v11, %s1152_s23  ;;  %531 = vst [vmem:[#allocation1] ss:$4 sm:$0xff] %v510_v9 }
  0x26   : > { %647 = vrot.lane.b32.xlu2 %v1263_v18, %s1155_s12 }
  0x27   : > { %v532_v14 = vld.sshfl [vmem:[#allocation1] sm:$0xff pattern:$0x73625140] }
  0x28   : > { %534 = vrot.lane.b32.xlu0 %v532_v14, %s1152_s23  ;;  %659 = vrot.lane.b32.xlu1 %v605_v13, %s1154_s10 }
  0x30   : > { %657 = vrot.lane.b32.xlu0 %v604_v8, %s1154_s10  ;;  %645 = vrot.lane.b32.xlu1 %v1260_v16, %s1155_s12  ;;  %s1034_s10 = sshll.u32 %s1379_s27, 1 }
  0x38   : > { %635 = vrot.lane.b32.xlu0 %v605_v13, %s1153_s9  ;;  %s473_s9 = scalar_lea.vmem %s1372_s7, %s1236_s11  ;;  %s481_s11 = scalar_lea.vmem %s1373_s8, %s1034_s10 }
  0x68   : > { %v552_v20 = vpop.permute.xlu2 %551 }
  0x70   : > { %v561_v31 = vpop.permute.xlu2 %560 }
  0x78   : > { %v634_v48 = vpop.permute.xlu2 %633 }
  0x80   : > { %v1273_v50 = vpop.permute.xlu2 %647 }
  0x8a   : > { %v516_v19 = vpop.permute.xlu1 %515 }
  0x92   : > { %v526_v22 = vpop.permute.xlu0 %525  ;;  %v524_v23 = vpop.permute.xlu1 %523 }
  0x93   : > { %v528_v25 = vsel %vm527_vm0, %v524_v23, %v526_v22  ;;  %v539_v26 = vsel %vm527_vm0, %v516_v19, %v524_v23 }
  0x94   : > { %v545_v27 = vunpack.c.l.bf16 %v539_v26  ;;  %v546_v28 = vunpack.c.l.bf16 %v528_v25 }
  0x96   : > { %v554_v29 = vmul.f32 %v552_v20, %v545_v27  ;;  %v555_v30 = vmul.f32 %v552_v20, %v546_v28 }
  0x98   : > { %v563_v32 = vadd.f32 %v561_v31, %v554_v29  ;;  %v564_v33 = vadd.f32 %v561_v31, %v555_v30 }
  0x9a   : > { %v535_v36 = vpop.permute.xlu0 %534  ;;  %v567_v37 = vmax.f32 %v564_v33, 0.0  ;;  %v566_v38 = vmax.f32 %v563_v32, 0.0  ;;  %v660_v51 = vpop.permute.xlu1 %659 }
  0x9b   : > { %v543_v40 = vsel %vm527_vm0, %v526_v22, %v535_v36 }
  0x9c   : > { %v547_v41 = vunpack.c.l.bf16 %v543_v40  ;;  %577 = vrot.lane.b32.xlu0 %v567_v37, %s1157_s13  ;;  %v569_v42 = vmul.f32 %v566_v38, %v495_v35 }
  0x9e   : > { %v556_v43 = vmul.f32 %v552_v20, %v547_v41  ;;  %575 = vrot.lane.b32.xlu2 %v569_v42, %s1157_s13 }
  0xa0   : > { %v565_v44 = vadd.f32 %v561_v31, %v556_v43 }
  0xa2   : > { %v568_v46 = vmax.f32 %v565_v44, 0.0  ;;  %v658_v49 = vpop.permute.xlu0 %657  ;;  %v646_v59 = vpop.permute.xlu1 %645 }
  0xa3   : > { %v662_v56 = vsel %vm661_vm4, %v658_v49, %v660_v51  ;;  %v650_v5 = vsel %vm649_vm6, %v646_v59, %v1273_v50  ;;  %vm799_vm4 = vcmask 293888  }
  0xa4   : > { %622 = vrot.lane.b32.xlu0 %v1260_v16, %s1152_s23  ;;  %v571_v47 = vmul.f32 %v568_v46, %v504_v45 }
  0xa6   : > { %608 = vrot.lane.b32.xlu2 %v604_v8, %s1158_s14  ;;  %579 = vrot.lane.b32.xlu1 %v571_v47, %s1157_s13 }
  0xaa   : > { %v636_v52 = vpop.permute.xlu0 %635 }
  0xab   : > { %v638_v0 = vsel %vm637_vm5, %v634_v48, %v636_v52  ;;  %vm855_vm5 = vcmask 9216  }
  0xac   : > { %610 = vrot.lane.b32.xlu0 %v605_v13, %s1158_s14 }
  0xae   : > { %624 = vrot.lane.b32.xlu1 %v1263_v18, %s1152_s23 }
  0xf8   : > { %v576_v53 = vpop.permute.xlu2 %575 }
  0xf9   : > { %v1276_v54 = vsel %vm581_vm3, 0.0, %v576_v53 }
  0xfa   : > { %v671_v58 = vrot.slane %v1276_v54, 4  ;;  %v666_v62 = vmul.f32 %v658_v49, %v1276_v54  ;;  %v642_v4 = vmul.f32 %v634_v48, %v1276_v54  ;;  %v654_v9 = vmul.f32 %v646_v59, %v1276_v54 }
  0xfc   : > { %v730_v11 = vrot.slane %v642_v4, 4 }
 0x100   : > { %v609_v15 = vpop.permute.xlu2 %608 }
 0x101   : > { %v617_v21 = vmul.f32 %v609_v15, %v1276_v54 }
 0x10e   : > { %v578_v55 = vpop.permute.xlu0 %577 }
 0x10f   : > { %v1279_v57 = vsel %vm581_vm3, %v576_v53, %v578_v55 }
 0x110   : > { %v1086_v60 = vpack.i.bf16 %v1279_v57, %v1276_v54  ;;  %v672_v61 = vrot.slane %v1279_v57, 4  ;;  %v667_v63 = vmul.f32 %v662_v56, %v1279_v57  ;;  %v643_v3 = vmul.f32 %v638_v0, %v1279_v57 }
 0x111   : > { %v655_v7 = vmul.f32 %v650_v5, %v1279_v57 }
 0x112   : > { %1087 = vrot.lane.b32.xlu0 %v1086_v60, %s1159_s15  ;;  %v1106_v1 = vpack.i.bf16 %v672_v61, %v671_v58  ;;  %v1091_v2 = vpack.i.bf16 %v667_v63, %v666_v62  ;;  %v731_v8 = vrot.slane %v643_v3, 4 }
 0x113   : > { %v1096_v13 = vpack.i.bf16 %v655_v7, %v654_v9 }
 0x114   : > { %1107 = vrot.lane.b32.xlu2 %v1106_v1, %s1160_s16  ;;  %1092 = vrot.lane.b32.xlu1 %v1091_v2, %s1161_s17  ;;  %v1116_v14 = vpack.i.bf16 %v731_v8, %v730_v11 }
 0x116   : > { %v623_v6 = vpop.permute.xlu0 %622 }
 0x117   : > { %v630_v31 = vmul.f32 %v623_v6, %v1276_v54 }
 0x118   : > { %v580_v10 = vpop.permute.xlu1 %579 }
 0x119   : > { %v583_v12 = vsel %vm581_vm3, %v578_v55, %v580_v10  ;;  %v702_v34 = vrot.slane %v630_v31, 4 }
 0x11a   : > { %1102 = vrot.lane.b32.xlu0 %v1106_v1, %s1162_s18  ;;  %v589_v17 = vsel %vm588_vm7, %v583_v12, 0.0 }
 0x11b   : > { %v673_v23 = vrot.slane %v589_v17, 4  ;;  %v668_v25 = vmul.f32 %v660_v51, %v589_v17  ;;  %v644_v27 = vmul.f32 %v636_v52, %v589_v17  ;;  %v656_v32 = vmul.f32 %v1273_v50, %v589_v17 }
 0x11c   : > { %1097 = vrot.lane.b32.xlu1 %v1096_v13, %s1163_s19  ;;  %1117 = vrot.lane.b32.xlu2 %v1116_v14, %s1164_s20 }
 0x11d   : > { %v732_v30 = vrot.slane %v644_v27, 4 }
 0x11e   : > { %v611_v19 = vpop.permute.xlu0 %610 }
 0x11f   : > { %v613_v20 = vsel %vm612_vm8, %v609_v15, %v611_v19  ;;  %v619_v36 = vmul.f32 %v611_v19, %v589_v17 }
 0x120   : > { %v618_v22 = vmul.f32 %v613_v20, %v1279_v57  ;;  %v625_v24 = vpop.permute.xlu1 %624 }
 0x121   : > { %v626_v28 = vsel %vm527_vm0, %v623_v6, %v625_v24  ;;  %v632_v37 = vmul.f32 %v625_v24, %v589_v17  ;;  %vm680_vm0 = vcmask 1039360   ;;  %v598_v24 = vmul.f32 %v1260_v16, %v1276_v54  ;;  %v798_v54 = vld [vmem:[%s1368_s3] sm:$0x1] }
 0x122   : > { %678 = vrot.lane.b32.xlu0 %v673_v23, %s1160_s16  ;;  %v1111_v26 = vpack.i.bf16 %v618_v22, %v617_v21  ;;  %v631_v29 = vmul.f32 %v626_v28, %v1279_v57 }
 0x123   : > { %v704_v38 = vrot.slane %v632_v37, 4 }
 0x124   : > { %776 = vrot.lane.b32.xlu2 %v668_v25, %s1161_s17  ;;  %1112 = vrot.lane.b32.xlu1 %v1111_v26, %s1165_s21  ;;  %v703_v33 = vrot.slane %v631_v29, 4 }
 0x126   : > { %v1121_v35 = vpack.i.bf16 %v703_v33, %v702_v34 }
 0x12a   : > { %737 = vrot.lane.b32.xlu0 %v732_v30, %s1164_s20 }
 0x12c   : > { %751 = vrot.lane.b32.xlu2 %v656_v32, %s1163_s19  ;;  %720 = vrot.lane.b32.xlu1 %v589_v17, %s1159_s15 }
 0x132   : > { %1122 = vrot.lane.b32.xlu0 %v1121_v35, %s1166_s22 }
 0x134   : > { %692 = vrot.lane.b32.xlu2 %v619_v36, %s1165_s21  ;;  %762 = vrot.lane.b32.xlu1 %v673_v23, %s1162_s18 }
 0x13c   : > { %709 = vrot.lane.b32.xlu1 %v704_v38, %s1166_s22  ;;  %v599_v38 = vmul.f32 %v1263_v18, %v1279_v57 }
 0x16e   : > { %v1307_v39 = vpop.permute.xlu2 %1107 }
 0x16f   : > { %v1110_v11 = vunpack.i.h.bf16 %v1307_v39  ;;  %v1109_v12 = vunpack.i.l.bf16 %v1307_v39 }
 0x171   : > { %v681_v22 = vsel %vm680_vm0, %v1109_v12, %v1110_v11 }
 0x172   : > { %v784_v30 = vsel %vm783_vm15, %v598_v24, %v681_v22 }
 0x176   : > { %v1118_v40 = vpop.permute.xlu2 %1117 }
 0x177   : > { %v1120_v56 = vunpack.i.h.bf16 %v1118_v40  ;;  %v1119_v58 = vunpack.i.l.bf16 %v1118_v40 }
 0x179   : > { %v740_v1 = vsel %vm739_vm12, %v1119_v58, %v1120_v56 }
 0x17e   : > { %v777_v45 = vpop.permute.xlu2 %776 }
 0x184   : > { %v1088_v41 = vpop.permute.xlu0 %1087 }
 0x185   : > { %v1090_v50 = vunpack.i.h.bf16 %v1088_v41  ;;  %v1089_v51 = vunpack.i.l.bf16 %v1088_v41 }
 0x186   : > { %v1093_v42 = vpop.permute.xlu1 %1092  ;;  %v752_v15 = vpop.permute.xlu2 %751 }
 0x187   : > { %v1095_v43 = vunpack.i.h.bf16 %v1093_v42  ;;  %v1094_v44 = vunpack.i.l.bf16 %v1093_v42  ;;  %v723_v0 = vsel %vm722_vm11, %v1089_v51, %v1090_v50 }
 0x188   : > { %v788_v4 = vsel %vm783_vm15, %v723_v0, %v740_v1 }
 0x189   : > { %v779_v46 = vsel %vm778_vm9, %v1094_v44, %v1095_v43  ;;  %v780_v47 = vsel %vm778_vm9, %v1095_v43, %v777_v45 }
 0x18a   : > { %v796_v48 = vpack.c.bf16 %v779_v46, %v779_v46  ;;  %v797_v49 = vpack.c.bf16 %v780_v47, %v780_v47 }
 0x18c   : > { %v1103_v52 = vpop.permute.xlu0 %1102  ;;  %v805_v53 = vsel %vm803_vm10, %v796_v48, 0  ;;  %v808_v55 = vsel %vm803_vm10, %v797_v49, 0 }
 0x18d   : > { %v1105_v59 = vunpack.i.h.bf16 %v1103_v52  ;;  %v1104_v60 = vunpack.i.l.bf16 %v1103_v52  ;;  %815 = vmatpush.bf16.msra.mxu0 %v805_v53  ;;  %828 = vmatpush.bf16.msra.mxu1 %v808_v55 }
 0x18e   : > { %v1098_v61 = vpop.permute.xlu1 %1097  ;;  %v693_v36 = vpop.permute.xlu2 %692 }
 0x18f   : > { %v1100_v62 = vunpack.i.h.bf16 %v1098_v61  ;;  %v1099_v63 = vunpack.i.l.bf16 %v1098_v61  ;;  %v765_v3 = vsel %vm764_vm14, %v1104_v60, %v1105_v59 }
 0x191   : > { %v754_v2 = vsel %vm753_vm13, %v1099_v63, %v1100_v62  ;;  %v755_v25 = vsel %vm753_vm13, %v1100_v62, %v752_v15 }
 0x192   : > { %v790_v5 = vsel %vm783_vm15, %v754_v2, %v765_v3 }
 0x193   : > { %v794_v6 = vpack.c.bf16 %v790_v5, %v788_v4 }
 0x194   : > { %v679_v7 = vpop.permute.xlu0 %678 }
 0x195   : > { %816 = vmatpush.bf16.msra.mxu0 %v794_v6  ;;  %v682_v35 = vsel %vm680_vm0, %v1110_v11, %v679_v7 }
 0x196   : > { %v1113_v8 = vpop.permute.xlu1 %1112  ;;  %v785_v41 = vsel %vm783_vm15, %v599_v38, %v682_v35 }
 0x197   : > { %v1115_v13 = vunpack.i.h.bf16 %v1113_v8  ;;  %v1114_v14 = vunpack.i.l.bf16 %v1113_v8 }
 0x199   : > { %v695_v28 = vsel %vm694_vm1, %v1114_v14, %v1115_v13  ;;  %v696_v40 = vsel %vm694_vm1, %v1115_v13, %v693_v36 }
 0x19c   : > { %v738_v9 = vpop.permute.xlu0 %737 }
 0x19d   : > { %v741_v26 = vsel %vm739_vm12, %v1120_v56, %v738_v9 }
 0x19e   : > { %v721_v10 = vpop.permute.xlu1 %720 }
 0x19f   : > { %v724_v19 = vsel %vm722_vm11, %v1090_v50, %v721_v10 }
 0x1a0   : > { %v789_v32 = vsel %vm783_vm15, %v724_v19, %v741_v26 }
 0x1a4   : > { %v1123_v17 = vpop.permute.xlu0 %1122 }
 0x1a5   : > { %v1125_v20 = vunpack.i.h.bf16 %v1123_v17  ;;  %v1124_v21 = vunpack.i.l.bf16 %v1123_v17 }
 0x1a6   : > { %v763_v23 = vpop.permute.xlu1 %762 }
 0x1a7   : > { %v766_v27 = vsel %vm764_vm14, %v1105_v59, %v763_v23  ;;  %v712_v29 = vsel %vm711_vm2, %v1124_v21, %v1125_v20 }
 0x1a8   : > { %v786_v31 = vsel %vm783_vm15, %v695_v28, %v712_v29  ;;  %v791_v33 = vsel %vm783_vm15, %v755_v25, %v766_v27 }
 0x1a9   : > { %v792_v34 = vpack.c.bf16 %v786_v31, %v784_v30  ;;  %v795_v16 = vpack.c.bf16 %v791_v33, %v789_v32 }
 0x1ab   : > { %817 = vmatpush.bf16.msra.mxu0 %v792_v34  ;;  %829 = vmatpush.bf16.msra.mxu1 %v795_v16 }
 0x1ae   : > { %v710_v37 = vpop.permute.xlu1 %709  ;;  %1035 = vmatmul.msk.bf16.vlgmr.msra.gmra.mxu0 %vm799_vm4, %v798_v54 }
 0x1af   : > { %v713_v39 = vsel %vm711_vm2, %v1125_v20, %v710_v37 }
 0x1b0   : > { %v787_v42 = vsel %vm783_vm15, %v696_v40, %v713_v39 }
 0x1b1   : > { %v793_v43 = vpack.c.bf16 %v787_v42, %v785_v41 }
 0x1b3   : > { %830 = vmatpush.bf16.msra.mxu1 %v793_v43 }
 0x1b6   : > { %1036 = vmatmul.msk.bf16.vlgmr.msra.gmra.mxu1 %vm799_vm4, %v798_v54 }
 0x22b   : > { %v819_v44 = vpop.f32.mrf.mxu0 }
 0x22c   : > { %v847_v45 = vmul.f32 %v819_v44, %v819_v44  ;;  %v842_v46 = vsel %vm803_vm10, %v819_v44, 0.0 }
 0x22e   : > { %v849_v50 = vsel %vm803_vm10, %v847_v45, 0.0 }
 0x233   : > { %v821_v47 = vpop.f32.mrf.mxu0  ;;  %v832_v48 = vpop.f32.mrf.mxu1 }
 0x234   : > { %v838_v18 = vrot.slane %v832_v48, 6  ;;  %v848_v57 = vmul.f32 %v832_v48, %v832_v48  ;;  %v843_v49 = vsel %vm803_vm10, %v832_v48, 0.0 }
 0x235   : > { %v844_v51 = vadd.f32 %v843_v49, %v842_v46 }
 0x236   : > { %v839_v52 = vsel %vm803_vm10, %v819_v44, %v838_v18  ;;  %v850_v53 = vsel %vm803_vm10, %v848_v57, 0.0 }
 0x237   : > { %841 = vst [vmem:[%s473_s9] sm:$0xf] %v839_v52  ;;  %845 = vadd.xlane.f32.xlu2 %v844_v51  ;;  %v851_v55 = vadd.f32 %v850_v53, %v849_v50 }
 0x239   : > { %852 = vadd.xlane.f32.xlu0 %v851_v55 }
 0x23b   : > { %v834_v56 = vpop.f32.mrf.mxu1 }
 0x2aa   : > { %v846_v58 = vpop.xlane.xlu2 %845 }
 0x2ac   : > { %v853_v59 = vpop.xlane.xlu0 %852 }
 0x2ad   : > { %v854_v60 = vsel %vm581_vm3, %v846_v58, %v853_v59 }
 0x2ae   : > { %856 = vst.msk [vmem:[%s481_s11] sm:$0x3] %vm855_vm5, %v854_v60 }
 0x2af PF: > { %s19_s29 = sadd.s32 1, %s1149_s29   ;;  %s1374_s27 = smov %s1145_s28 }
 0x2b0   : > { %p16_p5 = scmp.ge.s32.totalorder %s19_s29, 4   ;;  %s1375_s28 = smov %s1377_s30 }
 0x2b2   :  { %18 = sbr.rel (!%p16_p5) target bundleno = 2 (0x2), region = 96 }

// kernel: _lambda_.3
= control target key start
LH: loop header
LB: loop body
LE: loop exit
PB: predicated region body
PF: predicated region fallthrough
CT: control target
= control target key end

     0   :  { %s1733_s21 = smov 0   ;;  %s1735_s22 = smov 0   ;;  %s1923_s0 = inlined_call_operand.vmem [shape: bf16[2,4,256], index: 0, kind: input, shape index: {}, may-alias: {0,1,2}]   ;;  %s1924_s1 = inlined_call_operand.vmem [shape: bf16[2,4,256], index: 1, kind: input, shape index: {}, may-alias: {0,1,2}]   ;;  %s1925_s2 = inlined_call_operand.vmem [shape: bf16[2,4,256], index: 2, kind: input, shape index: {}, may-alias: {0,1,2}]   ;;  %s1926_s3 = inlined_call_operand.vmem [shape: bf16[2,4,256], index: 3, kind: input, shape index: {}, may-alias: {3,4,5}]   ;;  %s1927_s4 = inlined_call_operand.vmem [shape: bf16[2,4,256], index: 4, kind: input, shape index: {}, may-alias: {3,4,5}]   ;;  %s1928_s5 = inlined_call_operand.vmem [shape: bf16[2,4,256], index: 5, kind: input, shape index: {}, may-alias: {3,4,5}]   ;;  %s1929_s6 = inlined_call_operand.vmem [shape: bf16[4,72], index: 6, kind: input, shape index: {}]   ;;  %s1930_s7 = inlined_call_operand.vmem [shape: bf16[16,4], index: 7, kind: input, shape index: {}]   ;;  %s1931_s8 = inlined_call_operand.vmem [shape: f32[4,1], index: 8, kind: input, shape index: {}]   ;;  %s1932_s9 = inlined_call_operand.vmem [shape: f32[4,288], index: 9, kind: input, shape index: {}]   ;;  %s1933_s10 = inlined_call_operand.vmem [shape: f32[2,256], index: 10, kind: input, shape index: {}]   ;;  %s1934_s11 = inlined_call_operand.vmem [shape: bf16[2,4,256], index: 11, kind: output, shape index: {0}]   ;;  %s1935_s12 = inlined_call_operand.vmem [shape: f32[2,1,4,2], index: 12, kind: output, shape index: {1}]  }
   0x1   :  { %s1737_s23 = smov 0  }
   0x2 LB: > { %s35_s24 = sadd.s32 1, %s1646_s22  ;;  %p1507_p0 = scmp.ge.s32.totalorder %s1650_s23, 1  ;;  %s1650_s23 = sphi %s1737_s23, %s23_s23   ;;  %s1646_s22 = sphi %s1735_s22, %s1937_s22   ;;  %s1642_s21 = sphi %s1733_s21, %s1936_s21  }
   0x3   : > { %p37_p1 = scmp.ge.s32.totalorder %s35_s24, 2  ;;  %p529_p2 = scmp.lt.s32.totalorder %s1650_s23, 3 }
   0x5   : > { %s1939_s24 = smov (%p37_p1, %s35_s24), 0  ;;  %p530_p3 = pnand %p1507_p0, %p529_p2 }
   0x6   : > { %p647_p4 = scmp.lt.s32.totalorder (!%p530_p3), %s1642_s21, 1  ;;  %s1656_s29 = smov (!%p530_p3), 18  }
   0x7   : > { %533 = sbr.rel (%p530_p3) target bundleno = 867 (0x363), region = 64  ;;  %s1658_s15 = smov (!%p530_p3), 1  }
   0x8   : > { %s1659_s16 = smov (!%p530_p3), 2   ;;  %s1663_s18 = smov (!%p530_p3), 110  }
   0x9   : > { %s1664_s19 = smov (!%p530_p3), 112   ;;  %s1667_s26 = smov (!%p530_p3), 127  }
   0xc   : > { %s1941_s21 = smov (!%p647_p4, %s1642_s21), 1  ;;  %v988_v14 = vld [vmem:[%s1931_s8] sm:$0xf]  ;;  %v1653_v15 = vmov 0   ;;  %vm789_vm0 = vcmask 130048   ;;  %vm856_vm1 = vcmask 1041408   ;;  %v749_v45 = vlaneseq }
   0xd   : > { %s1751_s25 = sshll.u32 %s1941_s21, 2  ;;  %1586 = vset.pattern.permute.xlu2 %v1653_v15  ;;  %1627 = vset.pattern.permute.xlu0 %v1653_v15  ;;  %v1543_v23 = vld [vmem:[%s1930_s7] sm:$0xff]  ;;  %vm852_vm2 = vcmask 31744   ;;  %s1655_s21 = smov 32   ;;  %v907_v47 = vld [vmem:[%s1932_s9 + $0x8] sm:$0xf] }
   0xe   : > { %s654_s28 = scalar_lea.vmem %s1923_s0, %s1751_s25  ;;  %s667_s13 = scalar_lea.vmem %s1924_s1, %s1751_s25  ;;  %991 = vperm.xlu2 %1586, %v988_v14   ;;  %v1031_v27 = vld [vmem:[%s1933_s10] sm:$0xf]  ;;  %v750_v52 = vand.u32 127, %v749_v45  ;;  %v927_v55 = vperm.slane %v907_v47, 1  ;;  %v912_v57 = vperm.slane %v907_v47, 0  ;;  %vm1009_vm4 = vcmask 1043456  }
   0xf   : > { %v770_v0 = vld [vmem:[%s654_s28] sm:$0x3]  ;;  %s1537_s14 = sadd.s32 2, %s1751_s25  ;;  %s696_s20 = scalar_lea.vmem %s1926_s3, %s1751_s25  ;;  %v1042_v28 = vperm.slane %v1031_v27, 3  ;;  %v1034_v30 = vperm.slane %v1031_v27, 2  ;;  %v1041_v32 = vperm.slane %v1031_v27, 1 }
  0x10   : > { %774 = vst [vmem:[#allocation1] ss:$4 sm:$0xff] %v770_v0  ;;  %v771_v1 = vld [vmem:[%s667_s13] sm:$0xf]  ;;  %s680_s17 = scalar_lea.vmem %s1925_s2, %s1537_s14  ;;  %s709_s27 = scalar_lea.vmem %s1927_s4, %s1751_s25  ;;  %v1033_v36 = vperm.slane %v1031_v27, 0  ;;  %vm753_vm3 = vcmp.lt.s32.totalorder %v750_v52, 16 }
  0x11   : > { %v772_v3 = vld [vmem:[%s680_s17] sm:$0x3]  ;;  %s1652_s28 = smov 16   ;;  %s722_s13 = scalar_lea.vmem %s1928_s5, %s1537_s14  ;;  %v1799_v29 = vperm.slane %v1042_v28, 1  ;;  %v1802_v31 = vperm.slane %v1034_v30, 0  ;;  %v1805_v33 = vperm.slane %v1041_v32, 1 }
  0x12   : > { %v813_v6 = vld [vmem:[%s696_s20] sm:$0x3]  ;;  %s1654_s20 = smov 34   ;;  %v1817_v39 = vperm.slane %v1033_v36, 0  ;;  %vm1022_vm6 = vcmask 7168   ;;  %vm1102_vm7 = vcmask 277504  }
  0x13   : > { %v814_v8 = vld [vmem:[%s709_s27] sm:$0xf]  ;;  %vm1078_vm8 = vcmask 146432   ;;  %s1661_s14 = smov 95   ;;  %s1662_s17 = smov 94   ;;  %vm1029_vm9 = vcmask 269312  }
  0x14   : > { %v815_v10 = vld [vmem:[%s722_s13] sm:$0x3]  ;;  %vm1090_vm10 = vcmask 261120   ;;  %vm1053_vm11 = vcmask 15360   ;;  %vm1210_vm12 = vcmask 769024   ;;  %vm1196_vm13 = vcmask 777216  }
  0x15   : > { %v1810_v34 = vld [vmem:[%s1932_s9] sm:$0xff]  ;;  %vm1185_vm14 = vcmask 785408   ;;  %vm1171_vm15 = vcmask 900096  }
  0x16   : > { %v925_v35 = vperm.slane %v1810_v34, 1  ;;  %v910_v40 = vperm.slane %v1810_v34, 0  ;;  %v949_v43 = vperm.slane %v1810_v34, 2  ;;  %v964_v44 = vperm.slane %v1810_v34, 3 }
  0x17   : > { %v775_v2 = vld.sshfl [vmem:[#allocation1] sm:$0xff pattern:$0x73625140]  ;;  %v926_v58 = vperm.slane %v1810_v34, 5 }
  0x18   : > { %780 = vst [vmem:[#allocation1] ss:$4 sm:$0xff] %v771_v1  ;;  %777 = vrot.lane.b32.xlu2 %v775_v2, %s1652_s28  ;;  %v931_v38 = vperm.slane %v925_v35, 1  ;;  %v916_v46 = vperm.slane %v910_v40, 0  ;;  %v955_v49 = vperm.slane %v949_v43, 2  ;;  %v970_v50 = vperm.slane %v964_v44, 3 }
  0x19   : > { %v933_v1 = vperm.slane %v927_v55, 1 }
  0x1f   : > { %v781_v4 = vld.sshfl [vmem:[#allocation1] sm:$0xff pattern:$0x73625140]  ;;  %v783_v5 = vld.sshfl [vmem:[#allocation1 + $0x8] sm:$0xff pattern:$0x73625140] }
  0x20   : > { %793 = vst [vmem:[#allocation1] ss:$4 sm:$0xff] %v772_v3 }
  0x27   : > { %v794_v7 = vld.sshfl [vmem:[#allocation1] sm:$0xff pattern:$0x73625140] }
  0x28   : > { %817 = vst [vmem:[#allocation1] ss:$4 sm:$0xff] %v813_v6  ;;  %796 = vrot.lane.b32.xlu2 %v794_v7, %s1652_s28  ;;  %v1657_v7 = vmov 1.0  }
  0x2f   : > { %v818_v9 = vld.sshfl [vmem:[#allocation1] sm:$0xff pattern:$0x73625140] }
  0x30   : > { %820 = vrot.lane.b32.xlu0 %v818_v9, %s1652_s28  ;;  %823 = vst [vmem:[#allocation1] ss:$4 sm:$0xff] %v814_v8  ;;  %1098 = vrot.lane.b32.xlu2 %v1805_v33, %s1654_s20  ;;  %v757_v8 = vsel %vm753_vm3, 0.0, %v1657_v7  ;;  %v911_v9 = vperm.slane %v1810_v34, 4  ;;  %vm1146_vm3 = vcmask 916480  }
  0x37   : > { %v826_v11 = vld.sshfl [vmem:[#allocation1 + $0x8] sm:$0xff pattern:$0x73625140]  ;;  %v824_v12 = vld.sshfl [vmem:[#allocation1] sm:$0xff pattern:$0x73625140] }
  0x38   : > { %830 = vrot.lane.b32.xlu1 %v826_v11, %s1652_s28  ;;  %828 = vrot.lane.b32.xlu0 %v824_v12, %s1652_s28  ;;  %834 = vst [vmem:[#allocation1] ss:$4 sm:$0xff] %v815_v10  ;;  %v951_v12 = vperm.slane %v907_v47, 2 }
  0x39   : > { %1086 = vrot.lane.b32.xlu2 %v1817_v39, %s1655_s21 }
  0x3f   : > { %v835_v13 = vld.sshfl [vmem:[#allocation1] sm:$0xff pattern:$0x73625140] }
  0x40   : > { %837 = vrot.lane.b32.xlu1 %v835_v13, %s1652_s28  ;;  %785 = vrot.lane.b32.xlu0 %v781_v4, %s1652_s28  ;;  %v918_v4 = vperm.slane %v912_v57, 0  ;;  %v966_v13 = vperm.slane %v907_v47, 3 }
  0x41   : > { %1076 = vrot.lane.b32.xlu2 %v1799_v29, %s1656_s29 }
  0x48   : > { %787 = vrot.lane.b32.xlu1 %v783_v5, %s1652_s28  ;;  %1100 = vrot.lane.b32.xlu0 %v1799_v29, %s1654_s20  ;;  %v932_v5 = vperm.slane %v926_v58, 1  ;;  %s1665_s20 = smov 96  }
  0x49   : > { %1063 = vrot.lane.b32.xlu2 %v1817_v39, %s1652_s28 }
  0x50   : > { %1088 = vrot.lane.b32.xlu0 %v1802_v31, %s1655_s21  ;;  %1074 = vrot.lane.b32.xlu1 %v1805_v33, %s1656_s29  ;;  %s1666_s21 = smov 126  }
  0x68   : > { %v1815_v37 = vpop.permute.xlu2 %991 }
  0x72   : > { %v778_v51 = vpop.permute.xlu2 %777 }
  0xa2   : > { %v821_v16 = vpop.permute.xlu0 %820 }
  0xaa   : > { %v831_v17 = vpop.permute.xlu1 %830  ;;  %v829_v18 = vpop.permute.xlu0 %828 }
  0xab   : > { %v841_v19 = vsel %vm789_vm0, %v821_v16, %v829_v18  ;;  %v832_v20 = vsel %vm789_vm0, %v829_v18, %v831_v17  ;;  %v950_v16 = vperm.slane %v1810_v34, 6 }
  0xac   : > { %v857_v21 = vsel %vm856_vm1, %v841_v19, 0  ;;  %v860_v22 = vsel %vm856_vm1, %v832_v20, 0 }
  0xad   : > { %871 = vmatpush.bf16.msra.mxu1 %v857_v21  ;;  %v956_v30 = vperm.slane %v950_v16, 2 }
  0xb0   : > { %1527 = vmatmul.msk.bf16.vlgmr.msra.gmra.mxu1 %vm852_vm2, %v1543_v23 }
  0xb1   : > { %885 = vmatpush.bf16.msrb.mxu1 %v860_v22  ;;  %v917_v22 = vperm.slane %v911_v9, 0 }
  0xb2   : > { %v838_v24 = vpop.permute.xlu1 %837  ;;  %v1826_v53 = vpop.permute.xlu0 %785 }
  0xb3   : > { %v844_v25 = vsel %vm789_vm0, %v831_v17, %v838_v24  ;;  %v801_v62 = vsel %vm789_vm0, %v778_v51, %v1826_v53  ;;  %v965_v17 = vperm.slane %v1810_v34, 7  ;;  %v957_v24 = vperm.slane %v951_v12, 2 }
  0xb4   : > { %v862_v26 = vsel %vm856_vm1, %v844_v25, 0  ;;  %v807_v2 = vunpack.c.l.bf16 %v801_v62  ;;  %v972_v25 = vperm.slane %v966_v13, 3 }
  0xb5   : > { %899 = vmatpush.bf16.msra.mxu2 %v862_v26  ;;  %v971_v32 = vperm.slane %v965_v17, 3 }
  0xb6   : > { %v810_v14 = vmul.f32 %v807_v2, %v757_v8 }
  0xb8   : > { %1529 = vmatmul.msk.bf16.vlgmr.msra.gmra.mxu2 %vm852_vm2, %v1543_v23 }
  0xba   : > { %v788_v47 = vpop.permute.xlu1 %787 }
  0xbb   : > { %v790_v55 = vsel %vm789_vm0, %v1826_v53, %v788_v47 }
  0xc0   : > { %1528 = vmatmul.msk.bf16.vlgmr.msrb.gmra.mxu1 %vm852_vm2, %v1543_v23  ;;  %vm1132_vm2 = vcmask 1031168  }
 0x12d   : > { %v873_v41 = vpop.f32.mrf.mxu1 }
 0x12e   : > { %v934_v42 = vmul.f32 %v931_v38, %v873_v41  ;;  %v919_v54 = vmul.f32 %v916_v46, %v873_v41 }
 0x130   : > { %v940_v48 = vrot.slane %v934_v42, 4  ;;  %v752_v42 = vadd.s32 256, %v750_v52 }
 0x132   : > { %v946_v59 = vadd.f32 %v940_v48, %v919_v54  ;;  %vm762_vm5 = vcmp.ge.s32.totalorder %v752_v42, 272  ;;  %v797_v54 = vpop.permute.xlu2 %796 }
 0x133   : > { %v766_v57 = vsel %vm762_vm5, 0.0, %v1657_v7  ;;  %v805_v58 = vsel %vm789_vm0, %v788_v47, %v797_v54  ;;  %vm1118_vm5 = vcmask 1039360  }
 0x135   : > { %v875_v56 = vpop.f32.mrf.mxu1 }
 0x136   : > { %v958_v60 = vmul.f32 %v955_v49, %v875_v56  ;;  %v973_v61 = vmul.f32 %v970_v50, %v875_v56 }
 0x138   : > { %v961_v63 = vadd.f32 %v958_v60, %v946_v59  ;;  %v979_v0 = vrot.slane %v973_v61, 4  ;;  %v808_v59 = vunpack.c.l.bf16 %v790_v55  ;;  %v809_v61 = vunpack.c.l.bf16 %v805_v58 }
 0x13a   : > { %v985_v3 = vadd.f32 %v979_v0, %v961_v63  ;;  %v812_v53 = vmul.f32 %v809_v61, %v766_v57 }
 0x13b   : > { %v901_v6 = vpop.f32.mrf.mxu2 }
 0x13c   : > { %v994_v10 = vadd.f32 %v1815_v37, %v985_v3  ;;  %v936_v11 = vmul.f32 %v933_v1, %v901_v6  ;;  %v921_v18 = vmul.f32 %v918_v4, %v901_v6  ;;  %v1099_v1 = vpop.permute.xlu2 %1098 }
 0x13d   : > { %v887_v15 = vpop.f32.mrf.mxu1 }
 0x13e   : > { %v942_v19 = vrot.slane %v936_v11, 4  ;;  %v997_v20 = vmul.f32 %v994_v10, %v757_v8  ;;  %v935_v21 = vmul.f32 %v932_v5, %v887_v15  ;;  %v920_v35 = vmul.f32 %v917_v22, %v887_v15  ;;  %v1075_v5 = vpop.permute.xlu1 %1074 }
 0x140   : > { %v1003_v23 = vrot.slane %v997_v20, 4  ;;  %v941_v26 = vrot.slane %v935_v21, 4  ;;  %v948_v27 = vadd.f32 %v942_v19, %v921_v18 }
 0x142   : > { %v1010_v28 = vsel %vm1009_vm4, %v810_v14, %v1003_v23  ;;  %v947_v40 = vadd.f32 %v941_v26, %v920_v35 }
 0x143   : > { %1016 = vrot.lane.b32.xlu0 %v1010_v28, %s1658_s15  ;;  %v903_v34 = vpop.f32.mrf.mxu2 }
 0x144   : > { %v960_v36 = vmul.f32 %v957_v24, %v903_v34  ;;  %v975_v38 = vmul.f32 %v972_v25, %v903_v34  ;;  %v1087_v3 = vpop.permute.xlu2 %1086 }
 0x145   : > { %v889_v41 = vpop.f32.mrf.mxu1 }
 0x146   : > { %v963_v43 = vadd.f32 %v960_v36, %v948_v27  ;;  %v981_v44 = vrot.slane %v975_v38, 4  ;;  %v959_v45 = vmul.f32 %v956_v30, %v889_v41  ;;  %v974_v46 = vmul.f32 %v971_v32, %v889_v41 }
 0x148   : > { %v987_v48 = vadd.f32 %v981_v44, %v963_v43  ;;  %v962_v49 = vadd.f32 %v959_v45, %v947_v40  ;;  %v980_v50 = vrot.slane %v974_v46, 4 }
 0x14a   : > { %v986_v51 = vadd.f32 %v980_v50, %v962_v49  ;;  %v996_v56 = vadd.f32 %v1815_v37, %v987_v48 }
 0x14b   : > { %1049 = vrot.lane.b32.xlu0 %v1805_v33, %s1659_s16 }
 0x14c   : > { %v995_v52 = vadd.f32 %v1815_v37, %v986_v51  ;;  %v999_v62 = vmul.f32 %v996_v56, %v766_v57  ;;  %v1101_v37 = vpop.permute.xlu0 %1100  ;;  %v1077_v6 = vpop.permute.xlu2 %1076 }
 0x14d   : > { %v1103_v10 = vsel %vm1102_vm7, %v1099_v1, %v1101_v37  ;;  %v1079_v17 = vsel %vm1078_vm8, %v1075_v5, %v1077_v6  ;;  %vm1226_vm7 = vcmask 588800   ;;  %vm1283_vm8 = vcmask 11264  }
 0x14e   : > { %v1004_v60 = vrot.slane %v995_v52, 4  ;;  %v1005_v33 = vrot.slane %v999_v62, 4 }
 0x150   : > { %v1011_v63 = vsel %vm1009_vm4, %v808_v59, %v1004_v60  ;;  %v1012_v0 = vsel %vm1009_vm4, %v812_v53, %v1005_v33 }
 0x151   : > { %1018 = vrot.lane.b32.xlu1 %v1011_v63, %s1658_s15 }
 0x153   : > { %1065 = vrot.lane.b32.xlu0 %v1802_v31, %s1652_s28  ;;  %s1660_s28 = smov 111  }
 0x154   : > { %v1089_v2 = vpop.permute.xlu0 %1088  ;;  %v1064_v15 = vpop.permute.xlu2 %1063 }
 0x155   : > { %v1091_v28 = vsel %vm1090_vm10, %v1087_v3, %v1089_v2 }
 0x159   : > { %1020 = vrot.lane.b32.xlu1 %v1012_v0, %s1658_s15  ;;  %s735_s15 = scalar_lea.vmem %s1934_s11, %s1751_s25 }
 0x161   : > { %1051 = vrot.lane.b32.xlu1 %v1799_v29, %s1659_s16 }
 0x1b5   : > { %v1017_v4 = vpop.permute.xlu0 %1016 }
 0x1b6   : > { %v1854_v8 = vsel %vm1022_vm6, 0.0, %v1017_v4 }
 0x1b7   : > { %v1107_v13 = vmul.f32 %v1099_v1, %v1854_v8  ;;  %v1083_v20 = vmul.f32 %v1075_v5, %v1854_v8  ;;  %v1071_v24 = vmul.f32 %v1064_v15, %v1854_v8  ;;  %v1095_v35 = vmul.f32 %v1087_v3, %v1854_v8 }
 0x1bd   : > { %v1050_v7 = vpop.permute.xlu0 %1049 }
 0x1be   : > { %v1058_v36 = vmul.f32 %v1050_v7, %v1854_v8 }
 0x1c3   : > { %v1019_v9 = vpop.permute.xlu1 %1018 }
 0x1c4   : > { %v1857_v11 = vsel %vm1022_vm6, %v1017_v4, %v1019_v9 }
 0x1c5   : > { %v1066_v29 = vpop.permute.xlu0 %1065  ;;  %v1592_v12 = vpack.i.bf16 %v1857_v11, %v1854_v8  ;;  %v1108_v14 = vmul.f32 %v1103_v10, %v1857_v11  ;;  %v1084_v19 = vmul.f32 %v1079_v17, %v1857_v11  ;;  %v1096_v30 = vmul.f32 %v1091_v28, %v1857_v11 }
 0x1c6   : > { %v1067_v18 = vsel %vm789_vm0, %v1064_v15, %v1066_v29  ;;  %vm1157_vm0 = vcmask 908288  }
 0x1c7   : > { %1593 = vrot.lane.b32.xlu2 %v1592_v12, %s1660_s28  ;;  %1588 = vrot.lane.b32.xlu0 %v1592_v12, %s1661_s14  ;;  %v1597_v16 = vpack.i.bf16 %v1108_v14, %v1107_v13  ;;  %v1072_v21 = vmul.f32 %v1067_v18, %v1857_v11  ;;  %v1607_v26 = vpack.i.bf16 %v1084_v19, %v1083_v20 }
 0x1c8   : > { %v1602_v40 = vpack.i.bf16 %v1096_v30, %v1095_v35 }
 0x1c9   : > { %1598 = vrot.lane.b32.xlu1 %v1597_v16, %s1662_s17  ;;  %v1617_v27 = vpack.i.bf16 %v1072_v21, %v1071_v24 }
 0x1cb   : > { %v1021_v22 = vpop.permute.xlu1 %1020 }
 0x1cc   : > { %v1024_v23 = vsel %vm1022_vm6, %v1019_v9, %v1021_v22 }
 0x1cd   : > { %v1030_v25 = vsel %vm1029_vm9, %v1024_v23, 0.0 }
 0x1ce   : > { %v1109_v41 = vmul.f32 %v1101_v37, %v1030_v25  ;;  %v1097_v43 = vmul.f32 %v1089_v2, %v1030_v25  ;;  %v1085_v44 = vmul.f32 %v1077_v6, %v1030_v25  ;;  %v1073_v46 = vmul.f32 %v1066_v29, %v1030_v25 }
 0x1cf   : > { %1608 = vrot.lane.b32.xlu0 %v1607_v26, %s1663_s18  ;;  %1194 = vrot.lane.b32.xlu2 %v1030_v25, %s1661_s14  ;;  %s743_s14 = scalar_lea.vmem %s1935_s12, %s1751_s25 }
 0x1d1   : > { %1618 = vrot.lane.b32.xlu1 %v1617_v27, %s1664_s19 }
 0x1d3   : > { %v1052_v32 = vpop.permute.xlu1 %1051 }
 0x1d4   : > { %v1054_v34 = vsel %vm1053_vm11, %v1050_v7, %v1052_v32  ;;  %v1060_v45 = vmul.f32 %v1052_v32, %v1030_v25 }
 0x1d5   : > { %v1059_v38 = vmul.f32 %v1054_v34, %v1857_v11 }
 0x1d7   : > { %1603 = vrot.lane.b32.xlu2 %v1602_v40, %s1665_s20  ;;  %v1612_v42 = vpack.i.bf16 %v1059_v38, %v1058_v36 }
 0x1d9   : > { %1208 = vrot.lane.b32.xlu1 %v1109_v41, %s1662_s17  ;;  %1613 = vrot.lane.b32.xlu0 %v1612_v42, %s1666_s21  ;;  %v1039_v42 = vmul.f32 %v1817_v39, %v1854_v8 }
 0x1df   : > { %1155 = vrot.lane.b32.xlu2 %v1030_v25, %s1660_s28 }
 0x1e1   : > { %1183 = vrot.lane.b32.xlu1 %v1097_v43, %s1665_s20  ;;  %1169 = vrot.lane.b32.xlu0 %v1085_v44, %s1663_s18 }
 0x1e7   : > { %1130 = vrot.lane.b32.xlu2 %v1060_v45, %s1666_s21  ;;  %v1225_v45 = vld [vmem:[%s1929_s6] sm:$0x3] }
 0x1e9   : > { %1623 = vrot.lane.b32.xlu1 %v1592_v12, %s1667_s26  ;;  %1144 = vrot.lane.b32.xlu0 %v1073_v46, %s1664_s19 }
 0x1f1   : > { %1116 = vrot.lane.b32.xlu1 %v1030_v25, %s1667_s26 }
 0x221   : > { %v1594_v47 = vpop.permute.xlu2 %1593 }
 0x222   : > { %v1596_v0 = vunpack.i.h.bf16 %v1594_v47  ;;  %v1595_v37 = vunpack.i.l.bf16 %v1594_v47  ;;  %v1040_v47 = vmul.f32 %v1802_v31, %v1857_v11 }
 0x224   : > { %v1158_v5 = vsel %vm1157_vm0, %v1595_v37, %v1596_v0 }
 0x229   : > { %v1195_v48 = vpop.permute.xlu2 %1194 }
 0x231   : > { %v1604_v51 = vpop.permute.xlu2 %1603 }
 0x232   : > { %v1606_v58 = vunpack.i.h.bf16 %v1604_v51  ;;  %v1605_v59 = vunpack.i.l.bf16 %v1604_v51 }
 0x234   : > { %v1186_v2 = vsel %vm1185_vm14, %v1605_v59, %v1606_v58 }
 0x239   : > { %v1589_v49 = vpop.permute.xlu0 %1588  ;;  %v1156_v20 = vpop.permute.xlu2 %1155 }
 0x23a   : > { %v1591_v56 = vunpack.i.h.bf16 %v1589_v49  ;;  %v1590_v52 = vunpack.i.l.bf16 %v1589_v49  ;;  %v1159_v27 = vsel %vm1157_vm0, %v1596_v0, %v1156_v20 }
 0x23b   : > { %v1599_v50 = vpop.permute.xlu1 %1598 }
 0x23c   : > { %v1601_v54 = vunpack.i.h.bf16 %v1599_v50  ;;  %v1600_v55 = vunpack.i.l.bf16 %v1599_v50  ;;  %v1197_v63 = vsel %vm1196_vm13, %v1590_v52, %v1591_v56  ;;  %v1198_v24 = vsel %vm1196_vm13, %v1591_v56, %v1195_v48 }
 0x23d   : > { %v1221_v3 = vpack.c.bf16 %v1197_v63, %v1186_v2 }
 0x23e   : > { %v1211_v57 = vsel %vm1210_vm12, %v1600_v55, %v1601_v54 }
 0x23f   : > { %v1223_v60 = vpack.c.bf16 %v1211_v57, %v1211_v57 }
 0x241   : > { %v1609_v61 = vpop.permute.xlu0 %1608  ;;  %v1231_v62 = vsel %vm1009_vm4, %v1223_v60, 0  ;;  %v1131_v30 = vpop.permute.xlu2 %1130 }
 0x242   : > { %v1611_v53 = vunpack.i.h.bf16 %v1609_v61  ;;  %v1610_v33 = vunpack.i.l.bf16 %v1609_v61  ;;  %1239 = vmatpush.bf16.msra.mxu3 %v1231_v62 }
 0x243   : > { %v1619_v1 = vpop.permute.xlu1 %1618 }
 0x244   : > { %v1172_v4 = vsel %vm1171_vm15, %v1610_v33, %v1611_v53  ;;  %v1621_v7 = vunpack.i.h.bf16 %v1619_v1  ;;  %v1620_v9 = vunpack.i.l.bf16 %v1619_v1 }
 0x245   : > { %v1219_v6 = vpack.c.bf16 %v1172_v4, %v1158_v5 }
 0x246   : > { %1240 = vmatpush.bf16.msra.mxu3 %v1221_v3  ;;  %v1147_v17 = vsel %vm1146_vm3, %v1620_v9, %v1621_v7 }
 0x24a   : > { %1241 = vmatpush.bf16.msra.mxu3 %v1219_v6 }
 0x24b   : > { %v1614_v10 = vpop.permute.xlu0 %1613  ;;  %v1209_v29 = vpop.permute.xlu1 %1208 }
 0x24c   : > { %v1616_v12 = vunpack.i.h.bf16 %v1614_v10  ;;  %v1615_v13 = vunpack.i.l.bf16 %v1614_v10  ;;  %v1212_v14 = vsel %vm1210_vm12, %v1601_v54, %v1209_v29 }
 0x24d   : > { %v1224_v15 = vpack.c.bf16 %v1212_v14, %v1212_v14 }
 0x24e   : > { %v1133_v16 = vsel %vm1132_vm2, %v1615_v13, %v1616_v12  ;;  %v1134_v40 = vsel %vm1132_vm2, %v1616_v12, %v1131_v30 }
 0x24f   : > { %v1234_v18 = vsel %vm1009_vm4, %v1224_v15, 0  ;;  %v1217_v19 = vpack.c.bf16 %v1147_v17, %v1133_v16 }
 0x250   : > { %1252 = vmatpush.bf16.msra.mxu0 %v1234_v18 }
 0x251   : > { %1242 = vmatpush.bf16.msra.mxu3 %v1217_v19 }
 0x253   : > { %v1170_v21 = vpop.permute.xlu0 %1169  ;;  %v1184_v22 = vpop.permute.xlu1 %1183 }
 0x254   : > { %v1187_v23 = vsel %vm1185_vm14, %v1606_v58, %v1184_v22  ;;  %v1173_v26 = vsel %vm1171_vm15, %v1611_v53, %v1170_v21 }
 0x255   : > { %v1222_v25 = vpack.c.bf16 %v1198_v24, %v1187_v23  ;;  %v1220_v28 = vpack.c.bf16 %v1173_v26, %v1159_v27 }
 0x257   : > { %1253 = vmatpush.bf16.msra.mxu0 %v1222_v25 }
 0x25b   : > { %v1145_v32 = vpop.permute.xlu0 %1144  ;;  %v1624_v35 = vpop.permute.xlu1 %1623  ;;  %1254 = vmatpush.bf16.msra.mxu0 %v1220_v28 }
 0x25c   : > { %v1148_v34 = vsel %vm1146_vm3, %v1621_v7, %v1145_v32  ;;  %v1626_v36 = vunpack.i.h.bf16 %v1624_v35  ;;  %v1625_v38 = vunpack.i.l.bf16 %v1624_v35 }
 0x25d   : > { %v1218_v41 = vpack.c.bf16 %v1148_v34, %v1134_v40 }
 0x25e   : > { %v1119_v43 = vsel %vm1118_vm5, %v1625_v38, %v1626_v36 }
 0x25f   : > { %1255 = vmatpush.bf16.msra.mxu0 %v1218_v41  ;;  %v1215_v44 = vpack.c.bf16 %v1119_v43, %v1039_v42 }
 0x261   : > { %1243 = vmatpush.bf16.msra.mxu3 %v1215_v44 }
 0x263   : > { %v1117_v46 = vpop.permute.xlu1 %1116 }
 0x264   : > { %v1120_v48 = vsel %vm1118_vm5, %v1626_v36, %v1117_v46  ;;  %1530 = vmatmul.msk.bf16.vlgmr.msra.gmra.mxu3 %vm1226_vm7, %v1225_v45 }
 0x265   : > { %v1216_v49 = vpack.c.bf16 %v1120_v48, %v1040_v47 }
 0x267   : > { %1256 = vmatpush.bf16.msra.mxu0 %v1216_v49 }
 0x26a   : > { %1531 = vmatmul.msk.bf16.vlgmr.msra.gmra.mxu0 %vm1226_vm7, %v1225_v45 }
 0x2e7   : > { %v1245_v39 = vpop.f32.mrf.mxu3  ;;  %v1258_v8 = vpop.f32.mrf.mxu0 }
 0x2e8   : > { %v1275_v50 = vmul.f32 %v1245_v39, %v1245_v39  ;;  %v1262_v51 = vpack.c.bf16 %v1258_v8, %v1245_v39  ;;  %v1276_v54 = vmul.f32 %v1258_v8, %v1258_v8  ;;  %v1270_v55 = vsel %vm1009_vm4, %v1245_v39, 0.0 }
 0x2e9   : > { %v1271_v56 = vsel %vm1009_vm4, %v1258_v8, 0.0 }
 0x2ea   : > { %v1264_v31 = vrot.slane %v1262_v51, 2  ;;  %v1272_v11 = vadd.f32 %v1271_v56, %v1270_v55  ;;  %v1277_v52 = vsel %vm1009_vm4, %v1275_v50, 0.0  ;;  %v1278_v57 = vsel %vm1009_vm4, %v1276_v54, 0.0 }
 0x2eb   : > { %v1279_v58 = vadd.f32 %v1278_v57, %v1277_v52 }
 0x2ec   : > { %v1267_v59 = vsel %vm856_vm1, %v1262_v51, %v1264_v31  ;;  %1273 = vadd.xlane.f32.xlu2 %v1272_v11 }
 0x2ed   : > { %1269 = vst [vmem:[%s735_s15] sm:$0xf] %v1267_v59  ;;  %1280 = vadd.xlane.f32.xlu0 %v1279_v58 }
 0x2ef   : > { %v1247_v60 = vpop.f32.mrf.mxu3  ;;  %v1260_v61 = vpop.f32.mrf.mxu0 }
 0x35f   : > { %v1274_v62 = vpop.xlane.xlu2 %1273 }
 0x360   : > { %v1281_v63 = vpop.xlane.xlu0 %1280 }
 0x361   : > { %v1282_v53 = vsel %vm1022_vm6, %v1274_v62, %v1281_v63 }
 0x362   : > { %1284 = vst.msk [vmem:[%s743_s14] sm:$0xf] %vm1283_vm8, %v1282_v53 }
 0x363 PF: > { %s23_s23 = sadd.s32 1, %s1650_s23   ;;  %s1936_s21 = smov %s1646_s22 }
 0x364   : > { %p20_p5 = scmp.ge.s32.totalorder %s23_s23, 4   ;;  %s1937_s22 = smov %s1939_s24 }
 0x366   :  { %22 = sbr.rel (!%p20_p5) target bundleno = 2 (0x2), region = 121 }

</bundles_post_ra>
